<compile_context>
chip_gen: v6e
topology: v6e:2x2x1
jax: 0.10.0
libtpu: 0.0.40
codegen_flags: <defaults>
</compile_context>

<pallas_src>
import functools

import jax
import jax.numpy as jnp
import numpy as np
from jax.experimental import pallas as pl
from jax.experimental.pallas import tpu as pltpu


def _flat_shift(v, d, hw):
    """out[..., i] = v[..., i + d] if 0 <= i + d < hw else 0  (d static)."""
    if d == 0:
        return v
    if d >= hw or d <= -hw:
        return jnp.zeros_like(v)
    if d > 0:
        z = jnp.zeros(v.shape[:-1] + (d,), v.dtype)
        return jnp.concatenate([v[..., d:], z], axis=-1)
    z = jnp.zeros(v.shape[:-1] + (-d,), v.dtype)
    return jnp.concatenate([z, v[..., :hw + d]], axis=-1)


def cbam_kernel(x_ref, w1t_ref, w2t_ref, wc_ref, o_ref, *, K, H, W):
    # x_ref block: (Bt, C, HW) lane-dense; w1t (C, Cr) = fc1.weight.T;
    # w2t (Cr, C) = fc2.weight.T; wc (2*K*K,) conv weights in SMEM.
    x = x_ref[...]                                   # (Bt, C, HW)
    Bt, C, HW = x.shape
    P = K // 2
    inv_hw = 1.0 / (H * W)
    inv_c = 1.0 / C

    # ---------------- channel attention (MXU MLP) ----------------
    p_max = jnp.max(x, axis=-1)                                    # (Bt, C)
    p_avg = jnp.sum(x, axis=-1) * inv_hw                           # (Bt, C)
    p = jnp.concatenate([p_max, p_avg], axis=0).astype(jnp.float32)  # (2Bt, C)
    h = jnp.dot(p, w1t_ref[...], preferred_element_type=jnp.float32)  # (2Bt, Cr)
    h = jnp.maximum(h, 0.0)                                        # ReLU
    z = jnp.dot(h, w2t_ref[...], preferred_element_type=jnp.float32)  # (2Bt, C)
    scale = jax.nn.sigmoid(z[:Bt] + z[Bt:]).astype(x.dtype)        # (Bt, C)

    # Use the output block as scratch for xc = x * scale (drops one full
    # (Bt, C, HW) VMEM temporary).
    o_ref[...] = (x * scale[:, :, None]).astype(o_ref.dtype)
    xcv = o_ref[...]                                               # (Bt, C, HW)

    # ---------------- spatial attention ----------------
    # Channel pools, sublane-stacked: rows [0, Bt) = max map, [Bt, 2Bt) = avg.
    cmax = jnp.max(xcv, axis=1).astype(jnp.float32)                # (Bt, HW)
    cavg = jnp.sum(xcv.astype(jnp.float32), axis=1) * inv_c        # (Bt, HW)
    cm = jnp.concatenate([cmax, cavg], axis=0)                     # (2Bt, HW)

    # KxK conv (2 -> 1 channel, zero padding P) on the flattened spatial axis.
    # Step 1: 7 column-shifted + column-masked maps (one per dj), computed
    # once on the stacked map.  Column mask is dj-dependent only.
    col = jax.lax.broadcasted_iota(jnp.int32, (1, HW), 1) % W
    shifted = []
    for dj in range(K):
        d = dj - P
        ct = col + d
        ok = jnp.logical_and(ct >= 0, ct < W)
        shifted.append(jnp.where(ok, _flat_shift(cm, d, HW), 0.0))  # (2Bt, HW)

    # Step 2: per di, weighted sum over dj (per-sublane weight column picks
    # the max-channel vs avg-channel conv weight), then ONE row shift by
    # (di-P)*W (zero-fill handles row validity exactly), then accumulate.
    is_max = jax.lax.broadcasted_iota(jnp.int32, (2 * Bt, 1), 0) < Bt

    acc0 = jnp.zeros((2 * Bt, HW), jnp.float32)
    acc1 = jnp.zeros((2 * Bt, HW), jnp.float32)
    for di in range(K):
        s_di = jnp.zeros((2 * Bt, HW), jnp.float32)
        for dj in range(K):
            w_col = jnp.where(is_max,
                              wc_ref[di * K + dj],          # channel 0 (max map)
                              wc_ref[K * K + di * K + dj])  # channel 1 (avg map)
            s_di = s_di + w_col * shifted[dj]
        rs = _flat_shift(s_di, (di - P) * W, HW)
        if di % 2 == 0:
            acc0 = acc0 + rs
        else:
            acc1 = acc1 + rs
    sm_stacked = acc0 + acc1                                       # (2Bt, HW)
    sm = sm_stacked[:Bt] + sm_stacked[Bt:]                         # (Bt, HW)

    # NOTE: reference forward does NOT apply sigmoid to the conv output.
    o_ref[...] = (o_ref[...] * sm[:, None, :].astype(o_ref.dtype)).astype(o_ref.dtype)


def cbam_forward(x, w1, w2, wconv, *, kernel_size=7, batch_block=None):
    """x: [B, C, H, W]; w1: [C//r, C] (fc1.weight); w2: [C, C//r] (fc2.weight);
    wconv: [1, 2, K, K] (spatial conv weight, no bias)."""
    B, C, H, W = x.shape
    Cr = w1.shape[0]
    K = kernel_size
    HW = H * W

    # Lane-dense layout for the big tensors: (B, C, H*W). Free XLA reshape.
    x_flat = x.reshape(B, C, HW)
    w1t = jnp.transpose(w1)          # (C, Cr) = fc1.weight.T
    w2t = jnp.transpose(w2)          # (Cr, C) = fc2.weight.T
    wc_flat = wconv.reshape(-1)      # (2*K*K,)

    per_batch_bytes = C * HW * x.dtype.itemsize
    if batch_block is None:
        # Live blocks per step ~ 2x in + 2x out (double-buffered); target
        # ~24 MiB for them (v5e/v6e: 128 MiB VMEM; v7x: 64 MiB).
        budget = 24 * 1024 * 1024
        max_bt = max(1, budget // max(1, 4 * per_batch_bytes))
        if B > 1:
            # Keep >= 2 grid steps so the 'parallel' axis can shard across the
            # two TensorCores on v7x.
            max_bt = min(max_bt, max(1, B // 2))
        bt = 1
        for cand in range(1, B + 1):
            if B % cand == 0 and cand <= max_bt:
                bt = cand
    else:
        bt = batch_block
    assert B % bt == 0, "batch_block must divide the batch size"

    kernel = functools.partial(cbam_kernel, K=K, H=H, W=W)
    out_flat = pl.pallas_call(
        kernel,
        out_shape=jax.ShapeDtypeStruct((B, C, HW), x.dtype),
        grid_spec=pltpu.PrefetchScalarGridSpec(
            num_scalar_prefetch=0,
            grid=(B // bt,),
            in_specs=[
                pl.BlockSpec((bt, C, HW), lambda b: (b, 0, 0)),
                pl.BlockSpec((C, Cr), lambda b: (0, 0)),
                pl.BlockSpec((Cr, C), lambda b: (0, 0)),
                pl.BlockSpec(memory_space=pltpu.MemorySpace.SMEM),
            ],
            out_specs=pl.BlockSpec((bt, C, HW), lambda b: (b, 0, 0)),
        ),
        compiler_params=pltpu.CompilerParams(
            # Batches are independent -> parallel axis (shards across 2 TCs on v7x).
            dimension_semantics=("parallel",),
            # 48 MiB: comfortably above what the blocks need, below v7x's
            # 64 MiB physical VMEM (headroom), above v5e/v6e scoped defaults.
            vmem_limit_bytes=48 * 1024 * 1024,
        ),
    )(x_flat, w1t, w2t, wc_flat)
    return out_flat.reshape(B, C, H, W)


def cbam_reference(x, w1, w2, wconv):
    """Pure-JAX reference matching the PyTorch forward exactly."""
    mx = jnp.max(x, axis=(2, 3))
    av = jnp.mean(x, axis=(2, 3))

    def mlp(p):
        return jnp.maximum(p @ w1.T, 0.0) @ w2.T

    s = jax.nn.sigmoid(mlp(mx) + mlp(av))[:, :, None, None]
    xc = x * s
    cmax = jnp.max(xc, axis=1, keepdims=True)
    cavg = jnp.mean(xc, axis=1, keepdims=True)
    m = jnp.concatenate([cmax, cavg], axis=1)
    pad = wconv.shape[-1] // 2
    sm = jax.lax.conv_general_dilated(
        m, wconv, window_strides=(1, 1),
        padding=((pad, pad), (pad, pad)),
        dimension_numbers=("NCHW", "OIHW", "NCHW"))
    return xc * sm   # no sigmoid on the spatial map, per the reference forward


if __name__ == "__main__":
    B, C, H, W = 2, 8, 16, 16
    ratio, ksize = 4, 7
    Cr = C // ratio

    key = jax.random.PRNGKey(0)
    k1, k2, k3, kx = jax.random.split(key, 4)
    w1 = jax.random.normal(k1, (Cr, C), jnp.float32) * 0.5     # fc1.weight
    w2 = jax.random.normal(k2, (C, Cr), jnp.float32) * 0.5     # fc2.weight
    wconv = jax.random.normal(k3, (1, 2, ksize, ksize), jnp.float32) * 0.1
    x = jax.random.normal(kx, (B, C, H, W), jnp.float32)

    out = jax.block_until_ready(cbam_forward(x, w1, w2, wconv, kernel_size=ksize))
    ref = jax.block_until_ready(cbam_reference(x, w1, w2, wconv))

    err = float(jnp.max(jnp.abs(out - ref)))
    assert out.shape == (B, C, H, W)
    assert np.isfinite(err) and err < 2e-3, f"max abs err {err}"
    print("KERNEL_OK")
</pallas_src>

<mosaic_0001>
module attributes {stable_mosaic.version = 11 : i64} {
  func.func @cbam_kernel(%arg0: i32, %arg1: memref<1x8x256xf32, #tpu.memory_space<vmem>>, %arg2: memref<8x2xf32, #tpu.memory_space<vmem>>, %arg3: memref<2x8xf32, #tpu.memory_space<vmem>>, %arg4: memref<98xf32, #tpu.memory_space<smem>>, %arg5: memref<1x8x256xf32, #tpu.memory_space<vmem>>) attributes {dimension_semantics = [#tpu.dimension_semantics<parallel>], iteration_bounds = array<i64: 2>, scalar_prefetch = 0 : i64, scratch_operands = 0 : i64, tpu.core_type = #tpu.core_type<tc>, window_params = [{transform_indices = @transform_0, window_bounds = array<i64: 1, 8, 256>}, {pipeline_mode = #tpu.pipeline_mode<synchronous>, transform_indices = @transform_1, window_bounds = array<i64: 8, 2>}, {pipeline_mode = #tpu.pipeline_mode<synchronous>, transform_indices = @transform_2, window_bounds = array<i64: 2, 8>}, {transform_indices = @transform_3, window_bounds = array<i64: 98>}, {transform_indices = @transform_4, window_bounds = array<i64: 1, 8, 256>}]} {
    %c0 = arith.constant 0 : index
    %c0_0 = arith.constant 0 : index
    %c0_1 = arith.constant 0 : index
    %0 = vector.load %arg1[%c0, %c0_0, %c0_1] : memref<1x8x256xf32, #tpu.memory_space<vmem>>, vector<1x8x256xf32>
    %cst = arith.constant dense<0xFF800000> : vector<1x8xf32>
    %1 = vector.multi_reduction <maximumf>, %0, %cst [2] : vector<1x8x256xf32> to vector<1x8xf32>
    %cst_2 = arith.constant dense<0.000000e+00> : vector<1x8xf32>
    %2 = vector.multi_reduction <add>, %0, %cst_2 [2] : vector<1x8x256xf32> to vector<1x8xf32>
    %cst_3 = arith.constant 3.906250e-03 : f32
    %3 = vector.broadcast %cst_3 : f32 to vector<1x8xf32>
    %4 = arith.mulf %2, %3 : vector<1x8xf32>
    %5 = tpu.concatenate %1, %4 in 0 : vector<1x8xf32>, vector<1x8xf32> -> vector<2x8xf32>
    %c0_4 = arith.constant 0 : index
    %c0_5 = arith.constant 0 : index
    %6 = vector.load %arg2[%c0_4, %c0_5] : memref<8x2xf32, #tpu.memory_space<vmem>>, vector<8x2xf32>
    %cst_6 = arith.constant dense<0.000000e+00> : vector<2x2xf32>
    %7 = tpu.matmul %5, %6, %cst_6 {dimension_numbers = #tpu.dot_dimension_numbers<[1], [0], [0], [1], [0, 0, 1, 1], [], []>} : vector<2x8xf32>, vector<8x2xf32>, vector<2x2xf32> -> vector<2x2xf32>
    %cst_7 = arith.constant 0.000000e+00 : f32
    %8 = vector.broadcast %cst_7 : f32 to vector<2x2xf32>
    %9 = arith.maximumf %7, %8 : vector<2x2xf32>
    %c0_8 = arith.constant 0 : index
    %c0_9 = arith.constant 0 : index
    %10 = vector.load %arg3[%c0_8, %c0_9] : memref<2x8xf32, #tpu.memory_space<vmem>>, vector<2x8xf32>
    %cst_10 = arith.constant dense<0.000000e+00> : vector<2x8xf32>
    %11 = tpu.matmul %9, %10, %cst_10 {dimension_numbers = #tpu.dot_dimension_numbers<[1], [0], [0], [1], [0, 0, 1, 1], [], []>} : vector<2x2xf32>, vector<2x8xf32>, vector<2x8xf32> -> vector<2x8xf32>
    %12 = vector.extract_strided_slice %11 {offsets = [0, 0], sizes = [1, 8], strides = [1, 1]} : vector<2x8xf32> to vector<1x8xf32>
    %13 = vector.extract_strided_slice %11 {offsets = [1, 0], sizes = [1, 8], strides = [1, 1]} : vector<2x8xf32> to vector<1x8xf32>
    %14 = arith.addf %12, %13 : vector<1x8xf32>
    %15 = arith.negf %14 : vector<1x8xf32>
    %16 = math.exp %15 : vector<1x8xf32>
    %cst_11 = arith.constant 1.000000e+00 : f32
    %17 = vector.broadcast %cst_11 : f32 to vector<1x8xf32>
    %18 = arith.addf %17, %16 : vector<1x8xf32>
    %19 = arith.divf %17, %18 : vector<1x8xf32>
    %20 = vector.shape_cast %19 : vector<1x8xf32> to vector<1x8x1xf32>
    %21 = vector.broadcast %20 : vector<1x8x1xf32> to vector<1x8x256xf32>
    %22 = arith.mulf %0, %21 : vector<1x8x256xf32>
    %c0_12 = arith.constant 0 : index
    %c0_13 = arith.constant 0 : index
    %c0_14 = arith.constant 0 : index
    %23 = vector.load %arg5[%c0_12, %c0_13, %c0_14] : memref<1x8x256xf32, #tpu.memory_space<vmem>>, vector<1x8x256xf32>
    tpu.vector_store %arg5[%c0_12, %c0_13, %c0_14], %22 {strides = array<i32>} : memref<1x8x256xf32, #tpu.memory_space<vmem>>, vector<1x8x256xf32>,
    %c0_15 = arith.constant 0 : index
    %c0_16 = arith.constant 0 : index
    %c0_17 = arith.constant 0 : index
    %24 = vector.load %arg5[%c0_15, %c0_16, %c0_17] : memref<1x8x256xf32, #tpu.memory_space<vmem>>, vector<1x8x256xf32>
    %cst_18 = arith.constant dense<0xFF800000> : vector<1x256xf32>
    %25 = vector.multi_reduction <maximumf>, %24, %cst_18 [1] : vector<1x8x256xf32> to vector<1x256xf32>
    %cst_19 = arith.constant dense<0.000000e+00> : vector<1x256xf32>
    %26 = vector.multi_reduction <add>, %24, %cst_19 [1] : vector<1x8x256xf32> to vector<1x256xf32>
    %cst_20 = arith.constant 1.250000e-01 : f32
    %27 = vector.broadcast %cst_20 : f32 to vector<1x256xf32>
    %28 = arith.mulf %26, %27 : vector<1x256xf32>
    %29 = tpu.concatenate %25, %28 in 0 : vector<1x256xf32>, vector<1x256xf32> -> vector<2x256xf32>
    %30 = tpu.iota {dimensions = array<i32: 1>} : vector<1x256xi32>
    %c16_i32 = arith.constant 16 : i32
    %c0_i32 = arith.constant 0 : i32
    %31 = arith.cmpi eq, %c16_i32, %c0_i32 : i32
    %c1_i32 = arith.constant 1 : i32
    %32 = arith.select %31, %c1_i32, %c16_i32 : i32
    %33 = vector.broadcast %32 : i32 to vector<1x256xi32>
    %34 = arith.remsi %30, %33 : vector<1x256xi32>
    %c0_i32_21 = arith.constant 0 : i32
    %35 = vector.broadcast %c0_i32_21 : i32 to vector<1x256xi32>
    %36 = arith.cmpi ne, %34, %35 : vector<1x256xi32>
    %c0_i32_22 = arith.constant 0 : i32
    %37 = vector.broadcast %c0_i32_22 : i32 to vector<1x256xi32>
    %38 = arith.cmpi slt, %34, %37 : vector<1x256xi32>
    %c0_i32_23 = arith.constant 0 : i32
    %39 = arith.cmpi slt, %32, %c0_i32_23 : i32
    %40 = vector.broadcast %39 : i1 to vector<1x256xi1>
    %41 = vector.broadcast %40 : vector<1x256xi1> to vector<1x256xi1>
    %42 = arith.xori %38, %41 : vector<1x256xi1>
    %43 = arith.andi %42, %36 : vector<1x256xi1>
    %44 = vector.broadcast %32 : i32 to vector<1x256xi32>
    %45 = arith.addi %34, %44 : vector<1x256xi32>
    %46 = arith.select %43, %45, %34 : vector<1x256xi1>, vector<1x256xi32>
    %c-3_i32 = arith.constant -3 : i32
    %47 = vector.broadcast %c-3_i32 : i32 to vector<1x256xi32>
    %48 = arith.addi %46, %47 : vector<1x256xi32>
    %c0_i32_24 = arith.constant 0 : i32
    %49 = vector.broadcast %c0_i32_24 : i32 to vector<1x256xi32>
    %50 = arith.cmpi sge, %48, %49 : vector<1x256xi32>
    %c16_i32_25 = arith.constant 16 : i32
    %51 = vector.broadcast %c16_i32_25 : i32 to vector<1x256xi32>
    %52 = arith.cmpi slt, %48, %51 : vector<1x256xi32>
    %53 = arith.andi %50, %52 : vector<1x256xi1>
    %cst_26 = arith.constant 0.000000e+00 : f32
    %54 = vector.broadcast %cst_26 : f32 to vector<2x3xf32>
    %55 = vector.extract_strided_slice %29 {offsets = [0, 0], sizes = [2, 253], strides = [1, 1]} : vector<2x256xf32> to vector<2x253xf32>
    %56 = tpu.concatenate %54, %55 in 1 : vector<2x3xf32>, vector<2x253xf32> -> vector<2x256xf32>
    %cst_27 = arith.constant 0.000000e+00 : f32
    %57 = vector.shape_cast %53 : vector<1x256xi1> to vector<1x256xi1>
    %58 = vector.broadcast %57 : vector<1x256xi1> to vector<2x256xi1>
    %59 = vector.broadcast %cst_27 : f32 to vector<2x256xf32>
    %60 = arith.select %58, %56, %59 : vector<2x256xi1>, vector<2x256xf32>
    %c-2_i32 = arith.constant -2 : i32
    %61 = vector.broadcast %c-2_i32 : i32 to vector<1x256xi32>
    %62 = arith.addi %46, %61 : vector<1x256xi32>
    %c0_i32_28 = arith.constant 0 : i32
    %63 = vector.broadcast %c0_i32_28 : i32 to vector<1x256xi32>
    %64 = arith.cmpi sge, %62, %63 : vector<1x256xi32>
    %c16_i32_29 = arith.constant 16 : i32
    %65 = vector.broadcast %c16_i32_29 : i32 to vector<1x256xi32>
    %66 = arith.cmpi slt, %62, %65 : vector<1x256xi32>
    %67 = arith.andi %64, %66 : vector<1x256xi1>
    %cst_30 = arith.constant 0.000000e+00 : f32
    %68 = vector.broadcast %cst_30 : f32 to vector<2x2xf32>
    %69 = vector.extract_strided_slice %29 {offsets = [0, 0], sizes = [2, 254], strides = [1, 1]} : vector<2x256xf32> to vector<2x254xf32>
    %70 = tpu.concatenate %68, %69 in 1 : vector<2x2xf32>, vector<2x254xf32> -> vector<2x256xf32>
    %cst_31 = arith.constant 0.000000e+00 : f32
    %71 = vector.shape_cast %67 : vector<1x256xi1> to vector<1x256xi1>
    %72 = vector.broadcast %71 : vector<1x256xi1> to vector<2x256xi1>
    %73 = vector.broadcast %cst_31 : f32 to vector<2x256xf32>
    %74 = arith.select %72, %70, %73 : vector<2x256xi1>, vector<2x256xf32>
    %c-1_i32 = arith.constant -1 : i32
    %75 = vector.broadcast %c-1_i32 : i32 to vector<1x256xi32>
    %76 = arith.addi %46, %75 : vector<1x256xi32>
    %c0_i32_32 = arith.constant 0 : i32
    %77 = vector.broadcast %c0_i32_32 : i32 to vector<1x256xi32>
    %78 = arith.cmpi sge, %76, %77 : vector<1x256xi32>
    %c16_i32_33 = arith.constant 16 : i32
    %79 = vector.broadcast %c16_i32_33 : i32 to vector<1x256xi32>
    %80 = arith.cmpi slt, %76, %79 : vector<1x256xi32>
    %81 = arith.andi %78, %80 : vector<1x256xi1>
    %cst_34 = arith.constant 0.000000e+00 : f32
    %82 = vector.broadcast %cst_34 : f32 to vector<2x1xf32>
    %83 = vector.extract_strided_slice %29 {offsets = [0, 0], sizes = [2, 255], strides = [1, 1]} : vector<2x256xf32> to vector<2x255xf32>
    %84 = tpu.concatenate %82, %83 in 1 : vector<2x1xf32>, vector<2x255xf32> -> vector<2x256xf32>
    %cst_35 = arith.constant 0.000000e+00 : f32
    %85 = vector.shape_cast %81 : vector<1x256xi1> to vector<1x256xi1>
    %86 = vector.broadcast %85 : vector<1x256xi1> to vector<2x256xi1>
    %87 = vector.broadcast %cst_35 : f32 to vector<2x256xf32>
    %88 = arith.select %86, %84, %87 : vector<2x256xi1>, vector<2x256xf32>
    %c0_i32_36 = arith.constant 0 : i32
    %89 = vector.broadcast %c0_i32_36 : i32 to vector<1x256xi32>
    %90 = arith.addi %46, %89 : vector<1x256xi32>
    %c0_i32_37 = arith.constant 0 : i32
    %91 = vector.broadcast %c0_i32_37 : i32 to vector<1x256xi32>
    %92 = arith.cmpi sge, %90, %91 : vector<1x256xi32>
    %c16_i32_38 = arith.constant 16 : i32
    %93 = vector.broadcast %c16_i32_38 : i32 to vector<1x256xi32>
    %94 = arith.cmpi slt, %90, %93 : vector<1x256xi32>
    %95 = arith.andi %92, %94 : vector<1x256xi1>
    %cst_39 = arith.constant 0.000000e+00 : f32
    %96 = vector.shape_cast %95 : vector<1x256xi1> to vector<1x256xi1>
    %97 = vector.broadcast %96 : vector<1x256xi1> to vector<2x256xi1>
    %98 = vector.broadcast %cst_39 : f32 to vector<2x256xf32>
    %99 = arith.select %97, %29, %98 : vector<2x256xi1>, vector<2x256xf32>
    %c1_i32_40 = arith.constant 1 : i32
    %100 = vector.broadcast %c1_i32_40 : i32 to vector<1x256xi32>
    %101 = arith.addi %46, %100 : vector<1x256xi32>
    %c0_i32_41 = arith.constant 0 : i32
    %102 = vector.broadcast %c0_i32_41 : i32 to vector<1x256xi32>
    %103 = arith.cmpi sge, %101, %102 : vector<1x256xi32>
    %c16_i32_42 = arith.constant 16 : i32
    %104 = vector.broadcast %c16_i32_42 : i32 to vector<1x256xi32>
    %105 = arith.cmpi slt, %101, %104 : vector<1x256xi32>
    %106 = arith.andi %103, %105 : vector<1x256xi1>
    %cst_43 = arith.constant 0.000000e+00 : f32
    %107 = vector.broadcast %cst_43 : f32 to vector<2x1xf32>
    %108 = vector.extract_strided_slice %29 {offsets = [0, 1], sizes = [2, 255], strides = [1, 1]} : vector<2x256xf32> to vector<2x255xf32>
    %109 = tpu.concatenate %108, %107 in 1 : vector<2x255xf32>, vector<2x1xf32> -> vector<2x256xf32>
    %cst_44 = arith.constant 0.000000e+00 : f32
    %110 = vector.shape_cast %106 : vector<1x256xi1> to vector<1x256xi1>
    %111 = vector.broadcast %110 : vector<1x256xi1> to vector<2x256xi1>
    %112 = vector.broadcast %cst_44 : f32 to vector<2x256xf32>
    %113 = arith.select %111, %109, %112 : vector<2x256xi1>, vector<2x256xf32>
    %c2_i32 = arith.constant 2 : i32
    %114 = vector.broadcast %c2_i32 : i32 to vector<1x256xi32>
    %115 = arith.addi %46, %114 : vector<1x256xi32>
    %c0_i32_45 = arith.constant 0 : i32
    %116 = vector.broadcast %c0_i32_45 : i32 to vector<1x256xi32>
    %117 = arith.cmpi sge, %115, %116 : vector<1x256xi32>
    %c16_i32_46 = arith.constant 16 : i32
    %118 = vector.broadcast %c16_i32_46 : i32 to vector<1x256xi32>
    %119 = arith.cmpi slt, %115, %118 : vector<1x256xi32>
    %120 = arith.andi %117, %119 : vector<1x256xi1>
    %cst_47 = arith.constant 0.000000e+00 : f32
    %121 = vector.broadcast %cst_47 : f32 to vector<2x2xf32>
    %122 = vector.extract_strided_slice %29 {offsets = [0, 2], sizes = [2, 254], strides = [1, 1]} : vector<2x256xf32> to vector<2x254xf32>
    %123 = tpu.concatenate %122, %121 in 1 : vector<2x254xf32>, vector<2x2xf32> -> vector<2x256xf32>
    %cst_48 = arith.constant 0.000000e+00 : f32
    %124 = vector.shape_cast %120 : vector<1x256xi1> to vector<1x256xi1>
    %125 = vector.broadcast %124 : vector<1x256xi1> to vector<2x256xi1>
    %126 = vector.broadcast %cst_48 : f32 to vector<2x256xf32>
    %127 = arith.select %125, %123, %126 : vector<2x256xi1>, vector<2x256xf32>
    %c3_i32 = arith.constant 3 : i32
    %128 = vector.broadcast %c3_i32 : i32 to vector<1x256xi32>
    %129 = arith.addi %46, %128 : vector<1x256xi32>
    %c0_i32_49 = arith.constant 0 : i32
    %130 = vector.broadcast %c0_i32_49 : i32 to vector<1x256xi32>
    %131 = arith.cmpi sge, %129, %130 : vector<1x256xi32>
    %c16_i32_50 = arith.constant 16 : i32
    %132 = vector.broadcast %c16_i32_50 : i32 to vector<1x256xi32>
    %133 = arith.cmpi slt, %129, %132 : vector<1x256xi32>
    %134 = arith.andi %131, %133 : vector<1x256xi1>
    %cst_51 = arith.constant 0.000000e+00 : f32
    %135 = vector.broadcast %cst_51 : f32 to vector<2x3xf32>
    %136 = vector.extract_strided_slice %29 {offsets = [0, 3], sizes = [2, 253], strides = [1, 1]} : vector<2x256xf32> to vector<2x253xf32>
    %137 = tpu.concatenate %136, %135 in 1 : vector<2x253xf32>, vector<2x3xf32> -> vector<2x256xf32>
    %cst_52 = arith.constant 0.000000e+00 : f32
    %138 = vector.shape_cast %134 : vector<1x256xi1> to vector<1x256xi1>
    %139 = vector.broadcast %138 : vector<1x256xi1> to vector<2x256xi1>
    %140 = vector.broadcast %cst_52 : f32 to vector<2x256xf32>
    %141 = arith.select %139, %137, %140 : vector<2x256xi1>, vector<2x256xf32>
    %142 = tpu.iota {dimensions = array<i32: 0>} : vector<2x1xi32>
    %c1_i32_53 = arith.constant 1 : i32
    %143 = vector.broadcast %c1_i32_53 : i32 to vector<2x1xi32>
    %144 = arith.cmpi slt, %142, %143 : vector<2x1xi32>
    %cst_54 = arith.constant 0.000000e+00 : f32
    %145 = vector.broadcast %cst_54 : f32 to vector<2x256xf32>
    %cst_55 = arith.constant 0.000000e+00 : f32
    %146 = vector.broadcast %cst_55 : f32 to vector<2x256xf32>
    %cst_56 = arith.constant 0.000000e+00 : f32
    %147 = vector.broadcast %cst_56 : f32 to vector<2x256xf32>
    %c0_57 = arith.constant 0 : index
    %148 = memref.load %arg4[%c0_57] : memref<98xf32, #tpu.memory_space<smem>>
    %c49 = arith.constant 49 : index
    %149 = memref.load %arg4[%c49] : memref<98xf32, #tpu.memory_space<smem>>
    %150 = vector.broadcast %148 : f32 to vector<2x1xf32>
    %151 = vector.broadcast %149 : f32 to vector<2x1xf32>
    %152 = arith.select %144, %150, %151 : vector<2x1xi1>, vector<2x1xf32>
    %153 = vector.broadcast %152 : vector<2x1xf32> to vector<2x256xf32>
    %154 = arith.mulf %153, %60 : vector<2x256xf32>
    %155 = arith.addf %147, %154 : vector<2x256xf32>
    %c1 = arith.constant 1 : index
    %156 = memref.load %arg4[%c1] : memref<98xf32, #tpu.memory_space<smem>>
    %c50 = arith.constant 50 : index
    %157 = memref.load %arg4[%c50] : memref<98xf32, #tpu.memory_space<smem>>
    %158 = vector.broadcast %156 : f32 to vector<2x1xf32>
    %159 = vector.broadcast %157 : f32 to vector<2x1xf32>
    %160 = arith.select %144, %158, %159 : vector<2x1xi1>, vector<2x1xf32>
    %161 = vector.broadcast %160 : vector<2x1xf32> to vector<2x256xf32>
    %162 = arith.mulf %161, %74 : vector<2x256xf32>
    %163 = arith.addf %155, %162 : vector<2x256xf32>
    %c2 = arith.constant 2 : index
    %164 = memref.load %arg4[%c2] : memref<98xf32, #tpu.memory_space<smem>>
    %c51 = arith.constant 51 : index
    %165 = memref.load %arg4[%c51] : memref<98xf32, #tpu.memory_space<smem>>
    %166 = vector.broadcast %164 : f32 to vector<2x1xf32>
    %167 = vector.broadcast %165 : f32 to vector<2x1xf32>
    %168 = arith.select %144, %166, %167 : vector<2x1xi1>, vector<2x1xf32>
    %169 = vector.broadcast %168 : vector<2x1xf32> to vector<2x256xf32>
    %170 = arith.mulf %169, %88 : vector<2x256xf32>
    %171 = arith.addf %163, %170 : vector<2x256xf32>
    %c3 = arith.constant 3 : index
    %172 = memref.load %arg4[%c3] : memref<98xf32, #tpu.memory_space<smem>>
    %c52 = arith.constant 52 : index
    %173 = memref.load %arg4[%c52] : memref<98xf32, #tpu.memory_space<smem>>
    %174 = vector.broadcast %172 : f32 to vector<2x1xf32>
    %175 = vector.broadcast %173 : f32 to vector<2x1xf32>
    %176 = arith.select %144, %174, %175 : vector<2x1xi1>, vector<2x1xf32>
    %177 = vector.broadcast %176 : vector<2x1xf32> to vector<2x256xf32>
    %178 = arith.mulf %177, %99 : vector<2x256xf32>
    %179 = arith.addf %171, %178 : vector<2x256xf32>
    %c4 = arith.constant 4 : index
    %180 = memref.load %arg4[%c4] : memref<98xf32, #tpu.memory_space<smem>>
    %c53 = arith.constant 53 : index
    %181 = memref.load %arg4[%c53] : memref<98xf32, #tpu.memory_space<smem>>
    %182 = vector.broadcast %180 : f32 to vector<2x1xf32>
    %183 = vector.broadcast %181 : f32 to vector<2x1xf32>
    %184 = arith.select %144, %182, %183 : vector<2x1xi1>, vector<2x1xf32>
    %185 = vector.broadcast %184 : vector<2x1xf32> to vector<2x256xf32>
    %186 = arith.mulf %185, %113 : vector<2x256xf32>
    %187 = arith.addf %179, %186 : vector<2x256xf32>
    %c5 = arith.constant 5 : index
    %188 = memref.load %arg4[%c5] : memref<98xf32, #tpu.memory_space<smem>>
    %c54 = arith.constant 54 : index
    %189 = memref.load %arg4[%c54] : memref<98xf32, #tpu.memory_space<smem>>
    %190 = vector.broadcast %188 : f32 to vector<2x1xf32>
    %191 = vector.broadcast %189 : f32 to vector<2x1xf32>
    %192 = arith.select %144, %190, %191 : vector<2x1xi1>, vector<2x1xf32>
    %193 = vector.broadcast %192 : vector<2x1xf32> to vector<2x256xf32>
    %194 = arith.mulf %193, %127 : vector<2x256xf32>
    %195 = arith.addf %187, %194 : vector<2x256xf32>
    %c6 = arith.constant 6 : index
    %196 = memref.load %arg4[%c6] : memref<98xf32, #tpu.memory_space<smem>>
    %c55 = arith.constant 55 : index
    %197 = memref.load %arg4[%c55] : memref<98xf32, #tpu.memory_space<smem>>
    %198 = vector.broadcast %196 : f32 to vector<2x1xf32>
    %199 = vector.broadcast %197 : f32 to vector<2x1xf32>
    %200 = arith.select %144, %198, %199 : vector<2x1xi1>, vector<2x1xf32>
    %201 = vector.broadcast %200 : vector<2x1xf32> to vector<2x256xf32>
    %202 = arith.mulf %201, %141 : vector<2x256xf32>
    %203 = arith.addf %195, %202 : vector<2x256xf32>
    %cst_58 = arith.constant 0.000000e+00 : f32
    %204 = vector.broadcast %cst_58 : f32 to vector<2x48xf32>
    %205 = vector.extract_strided_slice %203 {offsets = [0, 0], sizes = [2, 208], strides = [1, 1]} : vector<2x256xf32> to vector<2x208xf32>
    %206 = tpu.concatenate %204, %205 in 1 : vector<2x48xf32>, vector<2x208xf32> -> vector<2x256xf32>
    %207 = arith.addf %145, %206 : vector<2x256xf32>
    %cst_59 = arith.constant 0.000000e+00 : f32
    %208 = vector.broadcast %cst_59 : f32 to vector<2x256xf32>
    %c7 = arith.constant 7 : index
    %209 = memref.load %arg4[%c7] : memref<98xf32, #tpu.memory_space<smem>>
    %c56 = arith.constant 56 : index
    %210 = memref.load %arg4[%c56] : memref<98xf32, #tpu.memory_space<smem>>
    %211 = vector.broadcast %209 : f32 to vector<2x1xf32>
    %212 = vector.broadcast %210 : f32 to vector<2x1xf32>
    %213 = arith.select %144, %211, %212 : vector<2x1xi1>, vector<2x1xf32>
    %214 = vector.broadcast %213 : vector<2x1xf32> to vector<2x256xf32>
    %215 = arith.mulf %214, %60 : vector<2x256xf32>
    %216 = arith.addf %208, %215 : vector<2x256xf32>
    %c8 = arith.constant 8 : index
    %217 = memref.load %arg4[%c8] : memref<98xf32, #tpu.memory_space<smem>>
    %c57 = arith.constant 57 : index
    %218 = memref.load %arg4[%c57] : memref<98xf32, #tpu.memory_space<smem>>
    %219 = vector.broadcast %217 : f32 to vector<2x1xf32>
    %220 = vector.broadcast %218 : f32 to vector<2x1xf32>
    %221 = arith.select %144, %219, %220 : vector<2x1xi1>, vector<2x1xf32>
    %222 = vector.broadcast %221 : vector<2x1xf32> to vector<2x256xf32>
    %223 = arith.mulf %222, %74 : vector<2x256xf32>
    %224 = arith.addf %216, %223 : vector<2x256xf32>
    %c9 = arith.constant 9 : index
    %225 = memref.load %arg4[%c9] : memref<98xf32, #tpu.memory_space<smem>>
    %c58 = arith.constant 58 : index
    %226 = memref.load %arg4[%c58] : memref<98xf32, #tpu.memory_space<smem>>
    %227 = vector.broadcast %225 : f32 to vector<2x1xf32>
    %228 = vector.broadcast %226 : f32 to vector<2x1xf32>
    %229 = arith.select %144, %227, %228 : vector<2x1xi1>, vector<2x1xf32>
    %230 = vector.broadcast %229 : vector<2x1xf32> to vector<2x256xf32>
    %231 = arith.mulf %230, %88 : vector<2x256xf32>
    %232 = arith.addf %224, %231 : vector<2x256xf32>
    %c10 = arith.constant 10 : index
    %233 = memref.load %arg4[%c10] : memref<98xf32, #tpu.memory_space<smem>>
    %c59 = arith.constant 59 : index
    %234 = memref.load %arg4[%c59] : memref<98xf32, #tpu.memory_space<smem>>
    %235 = vector.broadcast %233 : f32 to vector<2x1xf32>
    %236 = vector.broadcast %234 : f32 to vector<2x1xf32>
    %237 = arith.select %144, %235, %236 : vector<2x1xi1>, vector<2x1xf32>
    %238 = vector.broadcast %237 : vector<2x1xf32> to vector<2x256xf32>
    %239 = arith.mulf %238, %99 : vector<2x256xf32>
    %240 = arith.addf %232, %239 : vector<2x256xf32>
    %c11 = arith.constant 11 : index
    %241 = memref.load %arg4[%c11] : memref<98xf32, #tpu.memory_space<smem>>
    %c60 = arith.constant 60 : index
    %242 = memref.load %arg4[%c60] : memref<98xf32, #tpu.memory_space<smem>>
    %243 = vector.broadcast %241 : f32 to vector<2x1xf32>
    %244 = vector.broadcast %242 : f32 to vector<2x1xf32>
    %245 = arith.select %144, %243, %244 : vector<2x1xi1>, vector<2x1xf32>
    %246 = vector.broadcast %245 : vector<2x1xf32> to vector<2x256xf32>
    %247 = arith.mulf %246, %113 : vector<2x256xf32>
    %248 = arith.addf %240, %247 : vector<2x256xf32>
    %c12 = arith.constant 12 : index
    %249 = memref.load %arg4[%c12] : memref<98xf32, #tpu.memory_space<smem>>
    %c61 = arith.constant 61 : index
    %250 = memref.load %arg4[%c61] : memref<98xf32, #tpu.memory_space<smem>>
    %251 = vector.broadcast %249 : f32 to vector<2x1xf32>
    %252 = vector.broadcast %250 : f32 to vector<2x1xf32>
    %253 = arith.select %144, %251, %252 : vector<2x1xi1>, vector<2x1xf32>
    %254 = vector.broadcast %253 : vector<2x1xf32> to vector<2x256xf32>
    %255 = arith.mulf %254, %127 : vector<2x256xf32>
    %256 = arith.addf %248, %255 : vector<2x256xf32>
    %c13 = arith.constant 13 : index
    %257 = memref.load %arg4[%c13] : memref<98xf32, #tpu.memory_space<smem>>
    %c62 = arith.constant 62 : index
    %258 = memref.load %arg4[%c62] : memref<98xf32, #tpu.memory_space<smem>>
    %259 = vector.broadcast %257 : f32 to vector<2x1xf32>
    %260 = vector.broadcast %258 : f32 to vector<2x1xf32>
    %261 = arith.select %144, %259, %260 : vector<2x1xi1>, vector<2x1xf32>
    %262 = vector.broadcast %261 : vector<2x1xf32> to vector<2x256xf32>
    %263 = arith.mulf %262, %141 : vector<2x256xf32>
    %264 = arith.addf %256, %263 : vector<2x256xf32>
    %cst_60 = arith.constant 0.000000e+00 : f32
    %265 = vector.broadcast %cst_60 : f32 to vector<2x32xf32>
    %266 = vector.extract_strided_slice %264 {offsets = [0, 0], sizes = [2, 224], strides = [1, 1]} : vector<2x256xf32> to vector<2x224xf32>
    %267 = tpu.concatenate %265, %266 in 1 : vector<2x32xf32>, vector<2x224xf32> -> vector<2x256xf32>
    %268 = arith.addf %146, %267 : vector<2x256xf32>
    %cst_61 = arith.constant 0.000000e+00 : f32
    %269 = vector.broadcast %cst_61 : f32 to vector<2x256xf32>
    %c14 = arith.constant 14 : index
    %270 = memref.load %arg4[%c14] : memref<98xf32, #tpu.memory_space<smem>>
    %c63 = arith.constant 63 : index
    %271 = memref.load %arg4[%c63] : memref<98xf32, #tpu.memory_space<smem>>
    %272 = vector.broadcast %270 : f32 to vector<2x1xf32>
    %273 = vector.broadcast %271 : f32 to vector<2x1xf32>
    %274 = arith.select %144, %272, %273 : vector<2x1xi1>, vector<2x1xf32>
    %275 = vector.broadcast %274 : vector<2x1xf32> to vector<2x256xf32>
    %276 = arith.mulf %275, %60 : vector<2x256xf32>
    %277 = arith.addf %269, %276 : vector<2x256xf32>
    %c15 = arith.constant 15 : index
    %278 = memref.load %arg4[%c15] : memref<98xf32, #tpu.memory_space<smem>>
    %c64 = arith.constant 64 : index
    %279 = memref.load %arg4[%c64] : memref<98xf32, #tpu.memory_space<smem>>
    %280 = vector.broadcast %278 : f32 to vector<2x1xf32>
    %281 = vector.broadcast %279 : f32 to vector<2x1xf32>
    %282 = arith.select %144, %280, %281 : vector<2x1xi1>, vector<2x1xf32>
    %283 = vector.broadcast %282 : vector<2x1xf32> to vector<2x256xf32>
    %284 = arith.mulf %283, %74 : vector<2x256xf32>
    %285 = arith.addf %277, %284 : vector<2x256xf32>
    %c16 = arith.constant 16 : index
    %286 = memref.load %arg4[%c16] : memref<98xf32, #tpu.memory_space<smem>>
    %c65 = arith.constant 65 : index
    %287 = memref.load %arg4[%c65] : memref<98xf32, #tpu.memory_space<smem>>
    %288 = vector.broadcast %286 : f32 to vector<2x1xf32>
    %289 = vector.broadcast %287 : f32 to vector<2x1xf32>
    %290 = arith.select %144, %288, %289 : vector<2x1xi1>, vector<2x1xf32>
    %291 = vector.broadcast %290 : vector<2x1xf32> to vector<2x256xf32>
    %292 = arith.mulf %291, %88 : vector<2x256xf32>
    %293 = arith.addf %285, %292 : vector<2x256xf32>
    %c17 = arith.constant 17 : index
    %294 = memref.load %arg4[%c17] : memref<98xf32, #tpu.memory_space<smem>>
    %c66 = arith.constant 66 : index
    %295 = memref.load %arg4[%c66] : memref<98xf32, #tpu.memory_space<smem>>
    %296 = vector.broadcast %294 : f32 to vector<2x1xf32>
    %297 = vector.broadcast %295 : f32 to vector<2x1xf32>
    %298 = arith.select %144, %296, %297 : vector<2x1xi1>, vector<2x1xf32>
    %299 = vector.broadcast %298 : vector<2x1xf32> to vector<2x256xf32>
    %300 = arith.mulf %299, %99 : vector<2x256xf32>
    %301 = arith.addf %293, %300 : vector<2x256xf32>
    %c18 = arith.constant 18 : index
    %302 = memref.load %arg4[%c18] : memref<98xf32, #tpu.memory_space<smem>>
    %c67 = arith.constant 67 : index
    %303 = memref.load %arg4[%c67] : memref<98xf32, #tpu.memory_space<smem>>
    %304 = vector.broadcast %302 : f32 to vector<2x1xf32>
    %305 = vector.broadcast %303 : f32 to vector<2x1xf32>
    %306 = arith.select %144, %304, %305 : vector<2x1xi1>, vector<2x1xf32>
    %307 = vector.broadcast %306 : vector<2x1xf32> to vector<2x256xf32>
    %308 = arith.mulf %307, %113 : vector<2x256xf32>
    %309 = arith.addf %301, %308 : vector<2x256xf32>
    %c19 = arith.constant 19 : index
    %310 = memref.load %arg4[%c19] : memref<98xf32, #tpu.memory_space<smem>>
    %c68 = arith.constant 68 : index
    %311 = memref.load %arg4[%c68] : memref<98xf32, #tpu.memory_space<smem>>
    %312 = vector.broadcast %310 : f32 to vector<2x1xf32>
    %313 = vector.broadcast %311 : f32 to vector<2x1xf32>
    %314 = arith.select %144, %312, %313 : vector<2x1xi1>, vector<2x1xf32>
    %315 = vector.broadcast %314 : vector<2x1xf32> to vector<2x256xf32>
    %316 = arith.mulf %315, %127 : vector<2x256xf32>
    %317 = arith.addf %309, %316 : vector<2x256xf32>
    %c20 = arith.constant 20 : index
    %318 = memref.load %arg4[%c20] : memref<98xf32, #tpu.memory_space<smem>>
    %c69 = arith.constant 69 : index
    %319 = memref.load %arg4[%c69] : memref<98xf32, #tpu.memory_space<smem>>
    %320 = vector.broadcast %318 : f32 to vector<2x1xf32>
    %321 = vector.broadcast %319 : f32 to vector<2x1xf32>
    %322 = arith.select %144, %320, %321 : vector<2x1xi1>, vector<2x1xf32>
    %323 = vector.broadcast %322 : vector<2x1xf32> to vector<2x256xf32>
    %324 = arith.mulf %323, %141 : vector<2x256xf32>
    %325 = arith.addf %317, %324 : vector<2x256xf32>
    %cst_62 = arith.constant 0.000000e+00 : f32
    %326 = vector.broadcast %cst_62 : f32 to vector<2x16xf32>
    %327 = vector.extract_strided_slice %325 {offsets = [0, 0], sizes = [2, 240], strides = [1, 1]} : vector<2x256xf32> to vector<2x240xf32>
    %328 = tpu.concatenate %326, %327 in 1 : vector<2x16xf32>, vector<2x240xf32> -> vector<2x256xf32>
    %329 = arith.addf %207, %328 : vector<2x256xf32>
    %cst_63 = arith.constant 0.000000e+00 : f32
    %330 = vector.broadcast %cst_63 : f32 to vector<2x256xf32>
    %c21 = arith.constant 21 : index
    %331 = memref.load %arg4[%c21] : memref<98xf32, #tpu.memory_space<smem>>
    %c70 = arith.constant 70 : index
    %332 = memref.load %arg4[%c70] : memref<98xf32, #tpu.memory_space<smem>>
    %333 = vector.broadcast %331 : f32 to vector<2x1xf32>
    %334 = vector.broadcast %332 : f32 to vector<2x1xf32>
    %335 = arith.select %144, %333, %334 : vector<2x1xi1>, vector<2x1xf32>
    %336 = vector.broadcast %335 : vector<2x1xf32> to vector<2x256xf32>
    %337 = arith.mulf %336, %60 : vector<2x256xf32>
    %338 = arith.addf %330, %337 : vector<2x256xf32>
    %c22 = arith.constant 22 : index
    %339 = memref.load %arg4[%c22] : memref<98xf32, #tpu.memory_space<smem>>
    %c71 = arith.constant 71 : index
    %340 = memref.load %arg4[%c71] : memref<98xf32, #tpu.memory_space<smem>>
    %341 = vector.broadcast %339 : f32 to vector<2x1xf32>
    %342 = vector.broadcast %340 : f32 to vector<2x1xf32>
    %343 = arith.select %144, %341, %342 : vector<2x1xi1>, vector<2x1xf32>
    %344 = vector.broadcast %343 : vector<2x1xf32> to vector<2x256xf32>
    %345 = arith.mulf %344, %74 : vector<2x256xf32>
    %346 = arith.addf %338, %345 : vector<2x256xf32>
    %c23 = arith.constant 23 : index
    %347 = memref.load %arg4[%c23] : memref<98xf32, #tpu.memory_space<smem>>
    %c72 = arith.constant 72 : index
    %348 = memref.load %arg4[%c72] : memref<98xf32, #tpu.memory_space<smem>>
    %349 = vector.broadcast %347 : f32 to vector<2x1xf32>
    %350 = vector.broadcast %348 : f32 to vector<2x1xf32>
    %351 = arith.select %144, %349, %350 : vector<2x1xi1>, vector<2x1xf32>
    %352 = vector.broadcast %351 : vector<2x1xf32> to vector<2x256xf32>
    %353 = arith.mulf %352, %88 : vector<2x256xf32>
    %354 = arith.addf %346, %353 : vector<2x256xf32>
    %c24 = arith.constant 24 : index
    %355 = memref.load %arg4[%c24] : memref<98xf32, #tpu.memory_space<smem>>
    %c73 = arith.constant 73 : index
    %356 = memref.load %arg4[%c73] : memref<98xf32, #tpu.memory_space<smem>>
    %357 = vector.broadcast %355 : f32 to vector<2x1xf32>
    %358 = vector.broadcast %356 : f32 to vector<2x1xf32>
    %359 = arith.select %144, %357, %358 : vector<2x1xi1>, vector<2x1xf32>
    %360 = vector.broadcast %359 : vector<2x1xf32> to vector<2x256xf32>
    %361 = arith.mulf %360, %99 : vector<2x256xf32>
    %362 = arith.addf %354, %361 : vector<2x256xf32>
    %c25 = arith.constant 25 : index
    %363 = memref.load %arg4[%c25] : memref<98xf32, #tpu.memory_space<smem>>
    %c74 = arith.constant 74 : index
    %364 = memref.load %arg4[%c74] : memref<98xf32, #tpu.memory_space<smem>>
    %365 = vector.broadcast %363 : f32 to vector<2x1xf32>
    %366 = vector.broadcast %364 : f32 to vector<2x1xf32>
    %367 = arith.select %144, %365, %366 : vector<2x1xi1>, vector<2x1xf32>
    %368 = vector.broadcast %367 : vector<2x1xf32> to vector<2x256xf32>
    %369 = arith.mulf %368, %113 : vector<2x256xf32>
    %370 = arith.addf %362, %369 : vector<2x256xf32>
    %c26 = arith.constant 26 : index
    %371 = memref.load %arg4[%c26] : memref<98xf32, #tpu.memory_space<smem>>
    %c75 = arith.constant 75 : index
    %372 = memref.load %arg4[%c75] : memref<98xf32, #tpu.memory_space<smem>>
    %373 = vector.broadcast %371 : f32 to vector<2x1xf32>
    %374 = vector.broadcast %372 : f32 to vector<2x1xf32>
    %375 = arith.select %144, %373, %374 : vector<2x1xi1>, vector<2x1xf32>
    %376 = vector.broadcast %375 : vector<2x1xf32> to vector<2x256xf32>
    %377 = arith.mulf %376, %127 : vector<2x256xf32>
    %378 = arith.addf %370, %377 : vector<2x256xf32>
    %c27 = arith.constant 27 : index
    %379 = memref.load %arg4[%c27] : memref<98xf32, #tpu.memory_space<smem>>
    %c76 = arith.constant 76 : index
    %380 = memref.load %arg4[%c76] : memref<98xf32, #tpu.memory_space<smem>>
    %381 = vector.broadcast %379 : f32 to vector<2x1xf32>
    %382 = vector.broadcast %380 : f32 to vector<2x1xf32>
    %383 = arith.select %144, %381, %382 : vector<2x1xi1>, vector<2x1xf32>
    %384 = vector.broadcast %383 : vector<2x1xf32> to vector<2x256xf32>
    %385 = arith.mulf %384, %141 : vector<2x256xf32>
    %386 = arith.addf %378, %385 : vector<2x256xf32>
    %387 = arith.addf %268, %386 : vector<2x256xf32>
    %cst_64 = arith.constant 0.000000e+00 : f32
    %388 = vector.broadcast %cst_64 : f32 to vector<2x256xf32>
    %c28 = arith.constant 28 : index
    %389 = memref.load %arg4[%c28] : memref<98xf32, #tpu.memory_space<smem>>
    %c77 = arith.constant 77 : index
    %390 = memref.load %arg4[%c77] : memref<98xf32, #tpu.memory_space<smem>>
    %391 = vector.broadcast %389 : f32 to vector<2x1xf32>
    %392 = vector.broadcast %390 : f32 to vector<2x1xf32>
    %393 = arith.select %144, %391, %392 : vector<2x1xi1>, vector<2x1xf32>
    %394 = vector.broadcast %393 : vector<2x1xf32> to vector<2x256xf32>
    %395 = arith.mulf %394, %60 : vector<2x256xf32>
    %396 = arith.addf %388, %395 : vector<2x256xf32>
    %c29 = arith.constant 29 : index
    %397 = memref.load %arg4[%c29] : memref<98xf32, #tpu.memory_space<smem>>
    %c78 = arith.constant 78 : index
    %398 = memref.load %arg4[%c78] : memref<98xf32, #tpu.memory_space<smem>>
    %399 = vector.broadcast %397 : f32 to vector<2x1xf32>
    %400 = vector.broadcast %398 : f32 to vector<2x1xf32>
    %401 = arith.select %144, %399, %400 : vector<2x1xi1>, vector<2x1xf32>
    %402 = vector.broadcast %401 : vector<2x1xf32> to vector<2x256xf32>
    %403 = arith.mulf %402, %74 : vector<2x256xf32>
    %404 = arith.addf %396, %403 : vector<2x256xf32>
    %c30 = arith.constant 30 : index
    %405 = memref.load %arg4[%c30] : memref<98xf32, #tpu.memory_space<smem>>
    %c79 = arith.constant 79 : index
    %406 = memref.load %arg4[%c79] : memref<98xf32, #tpu.memory_space<smem>>
    %407 = vector.broadcast %405 : f32 to vector<2x1xf32>
    %408 = vector.broadcast %406 : f32 to vector<2x1xf32>
    %409 = arith.select %144, %407, %408 : vector<2x1xi1>, vector<2x1xf32>
    %410 = vector.broadcast %409 : vector<2x1xf32> to vector<2x256xf32>
    %411 = arith.mulf %410, %88 : vector<2x256xf32>
    %412 = arith.addf %404, %411 : vector<2x256xf32>
    %c31 = arith.constant 31 : index
    %413 = memref.load %arg4[%c31] : memref<98xf32, #tpu.memory_space<smem>>
    %c80 = arith.constant 80 : index
    %414 = memref.load %arg4[%c80] : memref<98xf32, #tpu.memory_space<smem>>
    %415 = vector.broadcast %413 : f32 to vector<2x1xf32>
    %416 = vector.broadcast %414 : f32 to vector<2x1xf32>
    %417 = arith.select %144, %415, %416 : vector<2x1xi1>, vector<2x1xf32>
    %418 = vector.broadcast %417 : vector<2x1xf32> to vector<2x256xf32>
    %419 = arith.mulf %418, %99 : vector<2x256xf32>
    %420 = arith.addf %412, %419 : vector<2x256xf32>
    %c32 = arith.constant 32 : index
    %421 = memref.load %arg4[%c32] : memref<98xf32, #tpu.memory_space<smem>>
    %c81 = arith.constant 81 : index
    %422 = memref.load %arg4[%c81] : memref<98xf32, #tpu.memory_space<smem>>
    %423 = vector.broadcast %421 : f32 to vector<2x1xf32>
    %424 = vector.broadcast %422 : f32 to vector<2x1xf32>
    %425 = arith.select %144, %423, %424 : vector<2x1xi1>, vector<2x1xf32>
    %426 = vector.broadcast %425 : vector<2x1xf32> to vector<2x256xf32>
    %427 = arith.mulf %426, %113 : vector<2x256xf32>
    %428 = arith.addf %420, %427 : vector<2x256xf32>
    %c33 = arith.constant 33 : index
    %429 = memref.load %arg4[%c33] : memref<98xf32, #tpu.memory_space<smem>>
    %c82 = arith.constant 82 : index
    %430 = memref.load %arg4[%c82] : memref<98xf32, #tpu.memory_space<smem>>
    %431 = vector.broadcast %429 : f32 to vector<2x1xf32>
    %432 = vector.broadcast %430 : f32 to vector<2x1xf32>
    %433 = arith.select %144, %431, %432 : vector<2x1xi1>, vector<2x1xf32>
    %434 = vector.broadcast %433 : vector<2x1xf32> to vector<2x256xf32>
    %435 = arith.mulf %434, %127 : vector<2x256xf32>
    %436 = arith.addf %428, %435 : vector<2x256xf32>
    %c34 = arith.constant 34 : index
    %437 = memref.load %arg4[%c34] : memref<98xf32, #tpu.memory_space<smem>>
    %c83 = arith.constant 83 : index
    %438 = memref.load %arg4[%c83] : memref<98xf32, #tpu.memory_space<smem>>
    %439 = vector.broadcast %437 : f32 to vector<2x1xf32>
    %440 = vector.broadcast %438 : f32 to vector<2x1xf32>
    %441 = arith.select %144, %439, %440 : vector<2x1xi1>, vector<2x1xf32>
    %442 = vector.broadcast %441 : vector<2x1xf32> to vector<2x256xf32>
    %443 = arith.mulf %442, %141 : vector<2x256xf32>
    %444 = arith.addf %436, %443 : vector<2x256xf32>
    %cst_65 = arith.constant 0.000000e+00 : f32
    %445 = vector.broadcast %cst_65 : f32 to vector<2x16xf32>
    %446 = vector.extract_strided_slice %444 {offsets = [0, 16], sizes = [2, 240], strides = [1, 1]} : vector<2x256xf32> to vector<2x240xf32>
    %447 = tpu.concatenate %446, %445 in 1 : vector<2x240xf32>, vector<2x16xf32> -> vector<2x256xf32>
    %448 = arith.addf %329, %447 : vector<2x256xf32>
    %cst_66 = arith.constant 0.000000e+00 : f32
    %449 = vector.broadcast %cst_66 : f32 to vector<2x256xf32>
    %c35 = arith.constant 35 : index
    %450 = memref.load %arg4[%c35] : memref<98xf32, #tpu.memory_space<smem>>
    %c84 = arith.constant 84 : index
    %451 = memref.load %arg4[%c84] : memref<98xf32, #tpu.memory_space<smem>>
    %452 = vector.broadcast %450 : f32 to vector<2x1xf32>
    %453 = vector.broadcast %451 : f32 to vector<2x1xf32>
    %454 = arith.select %144, %452, %453 : vector<2x1xi1>, vector<2x1xf32>
    %455 = vector.broadcast %454 : vector<2x1xf32> to vector<2x256xf32>
    %456 = arith.mulf %455, %60 : vector<2x256xf32>
    %457 = arith.addf %449, %456 : vector<2x256xf32>
    %c36 = arith.constant 36 : index
    %458 = memref.load %arg4[%c36] : memref<98xf32, #tpu.memory_space<smem>>
    %c85 = arith.constant 85 : index
    %459 = memref.load %arg4[%c85] : memref<98xf32, #tpu.memory_space<smem>>
    %460 = vector.broadcast %458 : f32 to vector<2x1xf32>
    %461 = vector.broadcast %459 : f32 to vector<2x1xf32>
    %462 = arith.select %144, %460, %461 : vector<2x1xi1>, vector<2x1xf32>
    %463 = vector.broadcast %462 : vector<2x1xf32> to vector<2x256xf32>
    %464 = arith.mulf %463, %74 : vector<2x256xf32>
    %465 = arith.addf %457, %464 : vector<2x256xf32>
    %c37 = arith.constant 37 : index
    %466 = memref.load %arg4[%c37] : memref<98xf32, #tpu.memory_space<smem>>
    %c86 = arith.constant 86 : index
    %467 = memref.load %arg4[%c86] : memref<98xf32, #tpu.memory_space<smem>>
    %468 = vector.broadcast %466 : f32 to vector<2x1xf32>
    %469 = vector.broadcast %467 : f32 to vector<2x1xf32>
    %470 = arith.select %144, %468, %469 : vector<2x1xi1>, vector<2x1xf32>
    %471 = vector.broadcast %470 : vector<2x1xf32> to vector<2x256xf32>
    %472 = arith.mulf %471, %88 : vector<2x256xf32>
    %473 = arith.addf %465, %472 : vector<2x256xf32>
    %c38 = arith.constant 38 : index
    %474 = memref.load %arg4[%c38] : memref<98xf32, #tpu.memory_space<smem>>
    %c87 = arith.constant 87 : index
    %475 = memref.load %arg4[%c87] : memref<98xf32, #tpu.memory_space<smem>>
    %476 = vector.broadcast %474 : f32 to vector<2x1xf32>
    %477 = vector.broadcast %475 : f32 to vector<2x1xf32>
    %478 = arith.select %144, %476, %477 : vector<2x1xi1>, vector<2x1xf32>
    %479 = vector.broadcast %478 : vector<2x1xf32> to vector<2x256xf32>
    %480 = arith.mulf %479, %99 : vector<2x256xf32>
    %481 = arith.addf %473, %480 : vector<2x256xf32>
    %c39 = arith.constant 39 : index
    %482 = memref.load %arg4[%c39] : memref<98xf32, #tpu.memory_space<smem>>
    %c88 = arith.constant 88 : index
    %483 = memref.load %arg4[%c88] : memref<98xf32, #tpu.memory_space<smem>>
    %484 = vector.broadcast %482 : f32 to vector<2x1xf32>
    %485 = vector.broadcast %483 : f32 to vector<2x1xf32>
    %486 = arith.select %144, %484, %485 : vector<2x1xi1>, vector<2x1xf32>
    %487 = vector.broadcast %486 : vector<2x1xf32> to vector<2x256xf32>
    %488 = arith.mulf %487, %113 : vector<2x256xf32>
    %489 = arith.addf %481, %488 : vector<2x256xf32>
    %c40 = arith.constant 40 : index
    %490 = memref.load %arg4[%c40] : memref<98xf32, #tpu.memory_space<smem>>
    %c89 = arith.constant 89 : index
    %491 = memref.load %arg4[%c89] : memref<98xf32, #tpu.memory_space<smem>>
    %492 = vector.broadcast %490 : f32 to vector<2x1xf32>
    %493 = vector.broadcast %491 : f32 to vector<2x1xf32>
    %494 = arith.select %144, %492, %493 : vector<2x1xi1>, vector<2x1xf32>
    %495 = vector.broadcast %494 : vector<2x1xf32> to vector<2x256xf32>
    %496 = arith.mulf %495, %127 : vector<2x256xf32>
    %497 = arith.addf %489, %496 : vector<2x256xf32>
    %c41 = arith.constant 41 : index
    %498 = memref.load %arg4[%c41] : memref<98xf32, #tpu.memory_space<smem>>
    %c90 = arith.constant 90 : index
    %499 = memref.load %arg4[%c90] : memref<98xf32, #tpu.memory_space<smem>>
    %500 = vector.broadcast %498 : f32 to vector<2x1xf32>
    %501 = vector.broadcast %499 : f32 to vector<2x1xf32>
    %502 = arith.select %144, %500, %501 : vector<2x1xi1>, vector<2x1xf32>
    %503 = vector.broadcast %502 : vector<2x1xf32> to vector<2x256xf32>
    %504 = arith.mulf %503, %141 : vector<2x256xf32>
    %505 = arith.addf %497, %504 : vector<2x256xf32>
    %cst_67 = arith.constant 0.000000e+00 : f32
    %506 = vector.broadcast %cst_67 : f32 to vector<2x32xf32>
    %507 = vector.extract_strided_slice %505 {offsets = [0, 32], sizes = [2, 224], strides = [1, 1]} : vector<2x256xf32> to vector<2x224xf32>
    %508 = tpu.concatenate %507, %506 in 1 : vector<2x224xf32>, vector<2x32xf32> -> vector<2x256xf32>
    %509 = arith.addf %387, %508 : vector<2x256xf32>
    %cst_68 = arith.constant 0.000000e+00 : f32
    %510 = vector.broadcast %cst_68 : f32 to vector<2x256xf32>
    %c42 = arith.constant 42 : index
    %511 = memref.load %arg4[%c42] : memref<98xf32, #tpu.memory_space<smem>>
    %c91 = arith.constant 91 : index
    %512 = memref.load %arg4[%c91] : memref<98xf32, #tpu.memory_space<smem>>
    %513 = vector.broadcast %511 : f32 to vector<2x1xf32>
    %514 = vector.broadcast %512 : f32 to vector<2x1xf32>
    %515 = arith.select %144, %513, %514 : vector<2x1xi1>, vector<2x1xf32>
    %516 = vector.broadcast %515 : vector<2x1xf32> to vector<2x256xf32>
    %517 = arith.mulf %516, %60 : vector<2x256xf32>
    %518 = arith.addf %510, %517 : vector<2x256xf32>
    %c43 = arith.constant 43 : index
    %519 = memref.load %arg4[%c43] : memref<98xf32, #tpu.memory_space<smem>>
    %c92 = arith.constant 92 : index
    %520 = memref.load %arg4[%c92] : memref<98xf32, #tpu.memory_space<smem>>
    %521 = vector.broadcast %519 : f32 to vector<2x1xf32>
    %522 = vector.broadcast %520 : f32 to vector<2x1xf32>
    %523 = arith.select %144, %521, %522 : vector<2x1xi1>, vector<2x1xf32>
    %524 = vector.broadcast %523 : vector<2x1xf32> to vector<2x256xf32>
    %525 = arith.mulf %524, %74 : vector<2x256xf32>
    %526 = arith.addf %518, %525 : vector<2x256xf32>
    %c44 = arith.constant 44 : index
    %527 = memref.load %arg4[%c44] : memref<98xf32, #tpu.memory_space<smem>>
    %c93 = arith.constant 93 : index
    %528 = memref.load %arg4[%c93] : memref<98xf32, #tpu.memory_space<smem>>
    %529 = vector.broadcast %527 : f32 to vector<2x1xf32>
    %530 = vector.broadcast %528 : f32 to vector<2x1xf32>
    %531 = arith.select %144, %529, %530 : vector<2x1xi1>, vector<2x1xf32>
    %532 = vector.broadcast %531 : vector<2x1xf32> to vector<2x256xf32>
    %533 = arith.mulf %532, %88 : vector<2x256xf32>
    %534 = arith.addf %526, %533 : vector<2x256xf32>
    %c45 = arith.constant 45 : index
    %535 = memref.load %arg4[%c45] : memref<98xf32, #tpu.memory_space<smem>>
    %c94 = arith.constant 94 : index
    %536 = memref.load %arg4[%c94] : memref<98xf32, #tpu.memory_space<smem>>
    %537 = vector.broadcast %535 : f32 to vector<2x1xf32>
    %538 = vector.broadcast %536 : f32 to vector<2x1xf32>
    %539 = arith.select %144, %537, %538 : vector<2x1xi1>, vector<2x1xf32>
    %540 = vector.broadcast %539 : vector<2x1xf32> to vector<2x256xf32>
    %541 = arith.mulf %540, %99 : vector<2x256xf32>
    %542 = arith.addf %534, %541 : vector<2x256xf32>
    %c46 = arith.constant 46 : index
    %543 = memref.load %arg4[%c46] : memref<98xf32, #tpu.memory_space<smem>>
    %c95 = arith.constant 95 : index
    %544 = memref.load %arg4[%c95] : memref<98xf32, #tpu.memory_space<smem>>
    %545 = vector.broadcast %543 : f32 to vector<2x1xf32>
    %546 = vector.broadcast %544 : f32 to vector<2x1xf32>
    %547 = arith.select %144, %545, %546 : vector<2x1xi1>, vector<2x1xf32>
    %548 = vector.broadcast %547 : vector<2x1xf32> to vector<2x256xf32>
    %549 = arith.mulf %548, %113 : vector<2x256xf32>
    %550 = arith.addf %542, %549 : vector<2x256xf32>
    %c47 = arith.constant 47 : index
    %551 = memref.load %arg4[%c47] : memref<98xf32, #tpu.memory_space<smem>>
    %c96 = arith.constant 96 : index
    %552 = memref.load %arg4[%c96] : memref<98xf32, #tpu.memory_space<smem>>
    %553 = vector.broadcast %551 : f32 to vector<2x1xf32>
    %554 = vector.broadcast %552 : f32 to vector<2x1xf32>
    %555 = arith.select %144, %553, %554 : vector<2x1xi1>, vector<2x1xf32>
    %556 = vector.broadcast %555 : vector<2x1xf32> to vector<2x256xf32>
    %557 = arith.mulf %556, %127 : vector<2x256xf32>
    %558 = arith.addf %550, %557 : vector<2x256xf32>
    %c48 = arith.constant 48 : index
    %559 = memref.load %arg4[%c48] : memref<98xf32, #tpu.memory_space<smem>>
    %c97 = arith.constant 97 : index
    %560 = memref.load %arg4[%c97] : memref<98xf32, #tpu.memory_space<smem>>
    %561 = vector.broadcast %559 : f32 to vector<2x1xf32>
    %562 = vector.broadcast %560 : f32 to vector<2x1xf32>
    %563 = arith.select %144, %561, %562 : vector<2x1xi1>, vector<2x1xf32>
    %564 = vector.broadcast %563 : vector<2x1xf32> to vector<2x256xf32>
    %565 = arith.mulf %564, %141 : vector<2x256xf32>
    %566 = arith.addf %558, %565 : vector<2x256xf32>
    %cst_69 = arith.constant 0.000000e+00 : f32
    %567 = vector.broadcast %cst_69 : f32 to vector<2x48xf32>
    %568 = vector.extract_strided_slice %566 {offsets = [0, 48], sizes = [2, 208], strides = [1, 1]} : vector<2x256xf32> to vector<2x208xf32>
    %569 = tpu.concatenate %568, %567 in 1 : vector<2x208xf32>, vector<2x48xf32> -> vector<2x256xf32>
    %570 = arith.addf %448, %569 : vector<2x256xf32>
    %571 = arith.addf %570, %509 : vector<2x256xf32>
    %572 = vector.extract_strided_slice %571 {offsets = [0, 0], sizes = [1, 256], strides = [1, 1]} : vector<2x256xf32> to vector<1x256xf32>
    %573 = vector.extract_strided_slice %571 {offsets = [1, 0], sizes = [1, 256], strides = [1, 1]} : vector<2x256xf32> to vector<1x256xf32>
    %574 = arith.addf %572, %573 : vector<1x256xf32>
    %c0_70 = arith.constant 0 : index
    %c0_71 = arith.constant 0 : index
    %c0_72 = arith.constant 0 : index
    %575 = vector.load %arg5[%c0_70, %c0_71, %c0_72] : memref<1x8x256xf32, #tpu.memory_space<vmem>>, vector<1x8x256xf32>
    %576 = vector.shape_cast %574 : vector<1x256xf32> to vector<1x1x256xf32>
    %577 = vector.broadcast %576 : vector<1x1x256xf32> to vector<1x8x256xf32>
    %578 = arith.mulf %575, %577 : vector<1x8x256xf32>
    %c0_73 = arith.constant 0 : index
    %c0_74 = arith.constant 0 : index
    %c0_75 = arith.constant 0 : index
    %579 = vector.load %arg5[%c0_73, %c0_74, %c0_75] : memref<1x8x256xf32, #tpu.memory_space<vmem>>, vector<1x8x256xf32>
    tpu.vector_store %arg5[%c0_73, %c0_74, %c0_75], %578 {strides = array<i32>} : memref<1x8x256xf32, #tpu.memory_space<vmem>>, vector<1x8x256xf32>,
    return
  }
  func.func @transform_0(%arg0: i32) -> (i32, i32, i32) {
    %c0_i32 = arith.constant 0 : i32
    %c0_i32_0 = arith.constant 0 : i32
    %c0_i32_1 = arith.constant 0 : i32
    return %arg0, %c0_i32, %c0_i32_0 : i32, i32, i32
  }
  func.func @transform_1(%arg0: i32) -> (i32, i32) {
    %c0_i32 = arith.constant 0 : i32
    %c0_i32_0 = arith.constant 0 : i32
    %c0_i32_1 = arith.constant 0 : i32
    return %c0_i32, %c0_i32_0 : i32, i32
  }
  func.func @transform_2(%arg0: i32) -> (i32, i32) {
    %c0_i32 = arith.constant 0 : i32
    %c0_i32_0 = arith.constant 0 : i32
    %c0_i32_1 = arith.constant 0 : i32
    return %c0_i32, %c0_i32_0 : i32, i32
  }
  func.func @transform_3(%arg0: i32) -> i32 {
    %c0_i32 = arith.constant 0 : i32
    %c0_i32_0 = arith.constant 0 : i32
    return %c0_i32 : i32
  }
  func.func @transform_4(%arg0: i32) -> (i32, i32, i32) {
    %c0_i32 = arith.constant 0 : i32
    %c0_i32_0 = arith.constant 0 : i32
    %c0_i32_1 = arith.constant 0 : i32
    return %arg0, %c0_i32, %c0_i32_0 : i32, i32, i32
  }
}

</mosaic_0001>

<bundles_post_ra>
// kernel: tpu_custom_call.1
= control target key start
LH: loop header
LB: loop body
LE: loop exit
PB: predicated region body
PF: predicated region fallthrough
CT: control target
= control target key end

     0   :  { %s2692_s0 = inlined_call_operand.hbm [shape: f32[2,8,256], index: 0, kind: input, shape index: {}]   ;;  %s2693_s1 = inlined_call_operand.vmem [shape: f32[8,2], index: 1, kind: input, shape index: {}]   ;;  %s2694_s2 = inlined_call_operand.vmem [shape: f32[2,8], index: 2, kind: input, shape index: {}]   ;;  %s2695_s3 = inlined_call_operand.vmem [shape: f32[98], index: 3, kind: input, shape index: {}]   ;;  %s2696_s4 = inlined_call_operand.hbm [shape: f32[2,8,256], index: 4, kind: output, shape index: {}]  }
   0x1   :  { %2740 = sst [smem:[#allocation86_spill]] %s2692_s0 }
   0x2   :  { %2741 = sst [smem:[#allocation87_spill]] %s2693_s1 }
   0x3   :  { %2742 = sst [smem:[#allocation88_spill]] %s2694_s2 }
   0x4   :  { %2743 = sst [smem:[#allocation89_spill]] %s2695_s3 }
   0x5   :  { %2744 = sst [smem:[#allocation90_spill]] %s2696_s4 }
   0x6   :  { %9 = vsyncpa [#allocation3], 0 }
   0x7   :  { %11 = vsyncpa [#allocation3 + $0x1], 0 }
   0x8   :  { %12 = vsyncpa [#allocation5], 0 }
   0x9   :  { %13 = vsyncpa [#allocation4], 0 }
   0xa   :  { %15 = vsyncpa [#allocation4 + $0x1], 0  ;;  %s1641_s15 = smov 0   ;;  %s1643_s16 = smov 0  }
   0xb   :  { %s1645_s17 = smov 0   ;;  %s1647_s18 = smov 0  }
   0xc LB: > { %2745 = sst [smem:[#allocation11_spill]] %s1585_s15  ;;  %s1662_s19 = sadd.s32 4294967295, %s1597_s18   ;;  %s1597_s18 = sphi %s1647_s18, %s2943_s18   ;;  %s1593_s17 = sphi %s1645_s17, %s2946_s17   ;;  %s1589_s16 = sphi %s1643_s16, %s2945_s16   ;;  %s1585_s15 = sphi %s1641_s15, %s2944_s15  }
   0xd   : > { %2746 = sst [smem:[#allocation12_spill]] %s1589_s16  ;;  %s1278_s20 = sadd.s32 4294967294, %s1597_s18  }
   0xe   : > { %2747 = sst [smem:[#allocation13_spill]] %s1593_s17  ;;  %p41_p0 = scmp.ne.s32.totalorder %s1589_s16, %s1585_s15 }
   0xf   : > { %2748 = sst [smem:[#allocation14_spill]] %s1597_s18  ;;  %p2697_p1 = scmp.eq.s32.totalorder %s1662_s19, 0 }
  0x10   : > { %2749 = sst [smem:[#allocation15_spill]] %s1662_s19  ;;  %p134_p3 = scmp.eq.s32.totalorder %s1278_s20, 1 }
  0x11   : > { %p1671_p4 = por %p2697_p1, %p41_p0  ;;  %p1279_p5 = scmp.ge.s32.totalorder %s1597_s18, 1 }
  0x12   : > { %p1676_p6 = por %p134_p3, %p41_p0  ;;  %p141_p7 = scmp.lt.s32.totalorder %s1597_s18, 3 }
  0x13   : > { %s2750_s21 = scalar_select %p1671_p4, 1, 0 }
  0x14   : > { %s2751_s22 = scalar_select %p1676_p6, 1, 0 }
  0x15   : > { %s2753_s3 = sld [smem:[#allocation89_spill]]  ;;  %p1684_p8 = pnand %p1279_p5, %p141_p7 }
  0x16   : > { %2752 = sst [smem:[#allocation16_spill]] %s2751_s22  ;;  %s1692_s27 = sadd.s32 1, %s1597_s18  }
  0x17   : > { %s2754_s26 = scalar_select %p1684_p8, 1, 0 }
  0x18   : > { %p1419_p10 = pneg %p1684_p8  ;;  %2755 = sst [smem:[#allocation17_spill]] %s1692_s27 }
  0x19   : > { %s25_s29 = ssub.s32 %s1597_s18, %s1692_s27  ;;  %s28_s5 = sadd.s32 1, %s1593_s17 }
  0x1a   : > { %p1696_p11 = pnand %p1419_p10, %p2697_p1  ;;  %p1702_p12 = scmp.eq.s32.totalorder %s25_s29, 0 }
  0x1b   : > { %s160_s25 = sshll.u32 %s2753_s3, 4  ;;  %p35_p13 = scmp.ne.s32.totalorder %s1593_s17, %s1589_s16  ;;  %s161_s25 = int_to_ptr.vmem [resolvable:$true] %s160_s25 }
  0x1c   : > { %s1486_s6 = scalar_lea.vmem %s161_s25, 16  ;;  %p1488_p3 = pneg %p1696_p11 }
  0x1d   : > { %p1487_p0 = scmp.ne.s32.totalorder %s161_s25, %s1486_s6  ;;  %p1494_p9 = scmp.lt.s32.totalorder %s161_s25, %s161_s25 }
  0x1e   : > { %p1495_p2 = scmp.lt.s32.totalorder %s1486_s6, %s1486_s6 }
  0x1f   : > { %p1489_p5 = pnand %p1488_p3, %p1487_p0 }
  0x20   : > { %p1496_p10 = por %p1495_p2, %p1494_p9 }
  0x21   : > { %p1490_p7 = pneg %p1489_p5 }
  0x23   : > { %p1497_p1 = pnand %p1496_p10, %p1490_p7 }
  0x25   : > { %1500 = shalt.err (!%p1497_p1)
}
  0x26   : > { %s1599_s7 = smov [#allocation6]   ;;  %p36_p2 = scmp.eq.s32.totalorder %s1597_s18, 0 }
  0x27   : > { %1422 = dma.vmem_to_smem (!%p1696_p11), %s161_s25, 16, %s1599_s7, [#allocation5]  }
  0x28   : > { %s1716_s8 = scalar_select %p1702_p12, %s1593_s17, %s28_s5  }
  0x29   : > { %p2759_p1 = scmp.eq.s32.totalorder %s1662_s19, 1  ;;  %p1432_p0 = scmp.lt.s32.totalorder %s1597_s18, 2 }
  0x2a   : > { %2758 = sst [smem:[#allocation18_spill]] %s1716_s8  ;;  %s171_s10 = sand.u32 1, %s1593_s17  }
  0x2b   : > { %p1724_p9 = por %p2759_p1, %p35_p13  ;;  %p37_p3 = por %p36_p2, %p35_p13 }
  0x2c   : > { %s1282_s11 = sshll.u32 %s171_s10, 4  ;;  %s1395_s12 = sshll.u32 %s1597_s18, 8 }
  0x2d   : > { %s2760_s9 = scalar_select %p1724_p9, 1, 0 }
  0x2e   : > { %s2762_s0 = sld [smem:[#allocation86_spill]]  ;;  %s175_s23 = scalar_lea.vmem [#allocation2], %s1282_s11 }
  0x2f   : > { %2761 = sst [smem:[#allocation19_spill]] %s2760_s9  ;;  %s183_s24 = sshll.u32 %s175_s23, 4  ;;  %s184_s24 = int_to_ptr.vmem [resolvable:$true] %s183_s24 }
  0x30   : > { %p1739_p11 = pnand %p1432_p0, %p37_p3  ;;  %s172_s28 = scalar_lea.sflag [#allocation3], %s171_s10 }
  0x32   : > { %p1503_p13 = pneg %p1739_p11 }
  0x34   : > { %s1737_s20 = scalar_lea.hbm %s2762_s0, %s1395_s12  ;;  %s1506_s6 = scalar_lea.hbm %s2762_s0, 512 }
  0x35   : > { %s1501_s29 = scalar_lea.hbm %s1737_s20, 256  ;;  %p1507_p10 = scmp.lt.s32.totalorder %s1737_s20, %s2762_s0 }
  0x36   : > { %p1502_p12 = scmp.ne.s32.totalorder %s1737_s20, %s1501_s29  ;;  %p1508_p2 = scmp.lt.s32.totalorder %s1506_s6, %s1501_s29 }
  0x38   : > { %p1504_p5 = pnand %p1503_p13, %p1502_p12  ;;  %p1509_p1 = por %p1508_p2, %p1507_p10 }
  0x3a   : > { %p1505_p7 = pneg %p1504_p5 }
  0x3c   : > { %p1510_p0 = pnand %p1509_p1, %p1505_p7 }
  0x3e   : > { %1513 = shalt.err (!%p1510_p0)
}
  0x3f   : > { %s1514_s12 = scalar_lea.vmem %s184_s24, 256  ;;  %s1600_s10 = smov [#allocation2]  }
  0x40   : > { %p1515_p3 = scmp.ne.s32.totalorder %s184_s24, %s1514_s12  ;;  %s1519_s13 = sshll.u32 %s1600_s10, 4  ;;  %s1520_s13 = int_to_ptr.vmem [resolvable:$false] %s1519_s13 }
  0x41   : > { %s1521_s14 = scalar_lea.vmem %s1520_s13, 512  ;;  %p1522_p12 = scmp.lt.s32.totalorder %s184_s24, %s1520_s13 }
  0x42   : > { %p1517_p6 = pnand %p1515_p3, %p1503_p13  ;;  %p1523_p5 = scmp.lt.s32.totalorder %s1521_s14, %s1514_s12 }
  0x44   : > { %p1518_p9 = pneg %p1517_p6  ;;  %p1524_p4 = por %p1523_p5, %p1522_p12 }
  0x46   : > { %p1525_p8 = pnand %p1524_p4, %p1518_p9 }
  0x48   : > { %1528 = shalt.err (!%p1525_p8)
}
  0x49   : > { %1426 = dma.hbm_to_vmem [thread:$0]  (!%p1739_p11), %s1737_s20, 256, %s184_s24, %s172_s28  }
  0x4a   : > { %p2764_p7 = scmp.ne.s32.totalorder %s2754_s26, 0 }
  0x4c   : > { %192 = sbr.rel (%p2764_p7) target bundleno = 1114 (0x45a), region = 36 }
  0x51   : > { %s1760_s23 = sand.u32 1, %s1589_s16   ;;  %p2766_p4 = scmp.ne.s32.totalorder %s2750_s21, 0 }
  0x52   : > { %2765 = sst [smem:[#allocation20_spill]] %s1760_s23  ;;  %s2701_s29 = sshll.u32 %s1760_s23, 4 }
  0x53   : > { %s195_s30 = scalar_lea.sflag [#allocation3], %s1760_s23  ;;  %s198_s5 = scalar_lea.vmem [#allocation2], %s2701_s29 }
  0x54   : > { %1572 = dma.done.wait (%p2766_p4), %s195_s30, 256  }
  0x55   : > { %1574 = vsyncadd (%p2766_p4), %s195_s30, 4294967040  ;;  %p2767_p6 = scmp.eq.s32.totalorder %s1662_s19, 0 }
  0x57   : > { %1576 = dma.done.wait (%p2767_p6), [#allocation5], 16   ;;  %p2768_p8 = pmov %p2767_p6 }
  0x59   : > { %1578 = vsyncadd (%p2768_p8), [#allocation5], 4294967280 }
  0x5a   : > { %207 = sfence }
  0x5b   : > { %v228_v0 = vld [vmem:[%s198_s5] sm:$0xff]  ;;  %v229_v1 = vld [vmem:[%s198_s5 + $0x8] sm:$0xff]  ;;  %s2769_s1 = sld [smem:[#allocation87_spill]]  ;;  %v1601_v5 = vmov 0.0   ;;  %vm1602_vm0 = vmmov 0   ;;  %v238_v6 = vlaneseq  ;;  %vm251_vm1 = vcmask 1040384  }
  0x5c   : > { %v233_v2 = vadd.f32 %v229_v1, %v228_v0  ;;  %v230_v3 = vmax.f32 %v228_v0, %v229_v1  ;;  %1401 = vmatprep.subr.mxu0 %v1601_v5  ;;  %1403 = vmatprep.mubr.msk.f32.mxu0 %vm1602_vm0, %v1601_v5  ;;  %vm254_vm2 = vcmask 64512   ;;  %s2770_s2 = sld [smem:[#allocation88_spill]]  ;;  %vm334_vm3 = vcmask 1041408   ;;  %s1603_s25 = smov 3  }
  0x5d   : > { %1406 = vmatprep.subr.mxu1 %v1601_v5  ;;  %1408 = vmatprep.mubr.msk.f32.mxu1 %vm1602_vm0, %v1601_v5  ;;  %v1777_v7 = vand.u32 127, %v238_v6  ;;  %v1779_v8 = vshrl.u32 %v238_v6, 7  ;;  %vm330_vm4 = vcmask 15360   ;;  %s1604_s28 = smov 126   ;;  %s1605_s6 = smov 2   ;;  %vm498_vm6 = vcmask 23552  }
  0x5e   : > { %234 = vadd.xlane.f32.xlu0 %v233_v2  ;;  %s2702_s7 = smov 125   ;;  %s1815_s11 = sld [smem:[#allocation6 + $0x3]]  ;;  %vm543_vm11 = vcmask 7168   ;;  %vm578_vm14 = vcmask 1039360  }
  0x5f   : > { %v242_v10 = vsub.s32 %v1777_v7, %v1779_v8  ;;  %v1789_v27 = vsub.s32 0, %v1779_v8  ;;  %s1607_s12 = smov 1   ;;  %s1818_s10 = sld [smem:[#allocation6 + $0x34]]  ;;  %v459_v59 = vadd.s32 128, %v1777_v7  ;;  %vm637_vm5 = vcmp.lt.s32.totalorder %v1779_v8, 1 }
  0x60   : > { %s1820_s13 = sld [smem:[#allocation6 + $0x11]]  ;;  %s1608_s24 = smov 127  }
  0x61   : > { %v253_v4 = vld [vmem:[%s2769_s1] sm:$0xff]  ;;  %2771 = vst [vmem:[#allocation21_spill] sm:$0xff] %v1789_v27  ;;  %s1822_s14 = sld [smem:[#allocation6 + $0x42]]  ;;  %s2775_s27 = smov 125  }
  0x62   : > { %231 = vmax.xlane.f32.xlu0 %v230_v3  ;;  %1402 = vmatpush3.msra.mxu0 %v253_v4  ;;  %v329_v16 = vld [vmem:[%s2770_s2] sm:$0x3]  ;;  %s1824_s30 = sld [smem:[#allocation6 + $0xa]] }
  0x63   : > { %1407 = vmatpush3.msk.msra.mxu1 %vm334_vm3, %v329_v16  ;;  %s1827_s5 = sld [smem:[#allocation6 + $0x3b]] }
  0x64   : > { %s1829_s26 = sld [smem:[#allocation6 + $0x1f]]  ;;  %v667_v60 = vstv %s1815_s11 }
  0x65   : > { %s1831_s20 = sld [smem:[#allocation6 + $0x50]]  ;;  %v668_v61 = vstv %s1818_s10 }
  0x66   : > { %s1833_s21 = sld [smem:[#allocation6 + $0x26]]  ;;  %v819_v62 = vstv %s1820_s13 }
  0x67   : > { %s1840_s29 = sld [smem:[#allocation6 + $0x5e]]  ;;  %v820_v63 = vstv %s1822_s14 }
  0x68   : > { %s1847_s0 = sld [smem:[#allocation6]] }
  0x69   : > { %s1849_s1 = sld [smem:[#allocation6 + $0x31]] }
  0x6a   : > { %s1851_s2 = sld [smem:[#allocation6 + $0x7]]  ;;  %v960_v2 = vstv %s1829_s26 }
  0x6b   : > { %s1854_s3 = sld [smem:[#allocation6 + $0x38]]  ;;  %v961_v3 = vstv %s1831_s20 }
  0x6c   : > { %s1856_s8 = sld [smem:[#allocation6 + $0xe]]  ;;  %v1036_v4 = vstv %s1833_s21 }
  0x6d   : > { %s1858_s17 = sld [smem:[#allocation6 + $0x3f]] }
  0x6e   : > { %s1860_s16 = sld [smem:[#allocation6 + $0x15]] }
  0x6f   : > { %s1866_s18 = sld [smem:[#allocation6 + $0x1c]] }
  0x70   : > { %s1868_s22 = sld [smem:[#allocation6 + $0x4d]] }
  0x71   : > { %s1870_s15 = sld [smem:[#allocation6 + $0x23]] }
  0x72   : > { %s1874_s4 = sld [smem:[#allocation6 + $0x2a]] }
  0x73   : > { %s1876_s9 = sld [smem:[#allocation6 + $0x5b]] }
  0x74   : > { %2774 = sst [smem:[#allocation24_spill]] %s1860_s16 }
  0x75   : > { %2777 = sst [smem:[#allocation26_spill]] %s1866_s18 }
  0x76   : > { %2778 = sst [smem:[#allocation27_spill]] %s1868_s22 }
  0x77   : > { %2779 = sst [smem:[#allocation28_spill]] %s1870_s15 }
  0x78   : > { %2781 = sst [smem:[#allocation30_spill]] %s1874_s4 }
  0x79   : > { %2782 = sst [smem:[#allocation31_spill]] %s1876_s9 }
  0x7a   : > { %s1878_s23 = sld [smem:[#allocation6 + $0x1]] }
  0x7b   : > { %s1880_s19 = sld [smem:[#allocation6 + $0x32]] }
  0x7c   : > { %s1882_s16 = sld [smem:[#allocation6 + $0x8]] }
  0x7d   : > { %s1888_s18 = sld [smem:[#allocation6 + $0x40]] }
  0x7e   : > { %s1890_s22 = sld [smem:[#allocation6 + $0x16]] }
  0x7f   : > { %s1892_s15 = sld [smem:[#allocation6 + $0x47]] }
  0x80   : > { %2783 = sst [smem:[#allocation32_spill]] %s1878_s23 }
  0x81   : > { %2784 = sst [smem:[#allocation33_spill]] %s1880_s19 }
  0x82   : > { %2785 = sst [smem:[#allocation34_spill]] %s1882_s16 }
  0x83   : > { %2788 = sst [smem:[#allocation37_spill]] %s1888_s18 }
  0x84   : > { %2789 = sst [smem:[#allocation38_spill]] %s1890_s22 }
  0x85   : > { %2790 = sst [smem:[#allocation39_spill]] %s1892_s15 }
  0x86   : > { %s1896_s4 = sld [smem:[#allocation6 + $0x4e]] }
  0x87   : > { %s1898_s9 = sld [smem:[#allocation6 + $0x24]] }
  0x88   : > { %s1900_s23 = sld [smem:[#allocation6 + $0x55]] }
  0x89   : > { %s1902_s19 = sld [smem:[#allocation6 + $0x2b]] }
  0x8a   : > { %s1904_s16 = sld [smem:[#allocation6 + $0x5c]] }
  0x8b   : > { %s1910_s18 = sld [smem:[#allocation6 + $0x4]] }
  0x8c   : > { %2792 = sst [smem:[#allocation41_spill]] %s1896_s4 }
  0x8d   : > { %s1912_s22 = sld [smem:[#allocation6 + $0x35]] }
  0x8e   : > { %2793 = sst [smem:[#allocation42_spill]] %s1900_s23 }
  0x8f   : > { %2794 = sst [smem:[#allocation43_spill]] %s1902_s19 }
  0x90   : > { %s1914_s15 = sld [smem:[#allocation6 + $0x5]] }
  0x91   : > { %2797 = sst [smem:[#allocation46_spill]] %s1910_s18 }
  0x92   : > { %s1918_s4 = sld [smem:[#allocation6 + $0x10]] }
  0x93   : > { %s1920_s23 = sld [smem:[#allocation6 + $0x6]] }
  0x94   : > { %s1922_s19 = sld [smem:[#allocation6 + $0x37]] }
  0x95   : > { %s1928_s18 = sld [smem:[#allocation6 + $0x43]] }
  0x96   : > { %2798 = sst [smem:[#allocation47_spill]] %s1914_s15 }
  0x97   : > { %s1930_s15 = sld [smem:[#allocation6 + $0x13]] }
  0x98   : > { %2800 = sst [smem:[#allocation49_spill]] %s1918_s4 }
  0x99   : > { %2801 = sst [smem:[#allocation50_spill]] %s1920_s23 }
  0x9a   : > { %2802 = sst [smem:[#allocation51_spill]] %s1922_s19 }
  0x9b   : > { %s1934_s4 = sld [smem:[#allocation6 + $0x14]] }
  0x9c   : > { %s1936_s23 = sld [smem:[#allocation6 + $0x45]] }
  0x9d   : > { %s1938_s19 = sld [smem:[#allocation6 + $0x9]] }
  0x9e   : > { %s1971_s11 = sld [smem:[#allocation6 + $0x3e]] }
  0x9f   : > { %s1979_s13 = sld [smem:[#allocation6 + $0x1e]] }
  0xa0   : > { %s1983_s14 = sld [smem:[#allocation6 + $0x4f]] }
  0xa1   : > { %s2813_s26 = sld [smem:[#allocation28_spill]] }
  0xa2   : > { %2806 = sst [smem:[#allocation55_spill]] %s1936_s23 }
  0xa3   : > { %s1952_s23 = sld [smem:[#allocation6 + $0xc]] }
  0xa4   : > { %s1997_s21 = sld [smem:[#allocation6 + $0x20]] }
  0xe7   : > { %v235_v9 = vpop.xlane.xlu0 %234 }
  0xe8   : > { %v236_v11 = vmul.f32 0.00390625, %v235_v9  ;;  %v1113_v9 = vstv %s1840_s29  ;;  %s2809_s29 = sld [smem:[#allocation24_spill]] }
  0xea   : > { %v249_v13 = vrot.slane %v236_v11, %v242_v10  ;;  %v1969_v11 = vand.u32 15, %v459_v59 }
  0xeb   : > { %v232_v12 = vpop.xlane.xlu0 %231 }
  0xec   : > { %v243_v14 = vrot.slane %v232_v12, %v242_v10  ;;  %v1967_v10 = vand.u32 15, %v1777_v7  ;;  %v669_v12 = vsel %vm637_vm5, %v667_v60, %v668_v61  ;;  %v962_v7 = vsel %vm637_vm5, %v960_v2, %v961_v3 }
  0xee   : > { %v252_v15 = vsel %vm251_vm1, %v243_v14, %v249_v13  ;;  %v821_v13 = vsel %vm637_vm5, %v819_v62, %v820_v63 }
  0xef   : > { %1404 = vmatmul.mubr.msk.f32.vlgmr.msra.gmra.mxu0 %vm254_vm2, %v252_v15 }
 0x1af   : > { %v324_v17 = vpop.f32.mrf.mxu0 }
 0x1b0   : > { %v328_v18 = vmax.f32 %v324_v17, 0.0 }
 0x1b1   : > { %v1405_v19 = vpop.f32.mrf.mxu0 }
 0x1b2   : > { %1409 = vmatmul.mubr.msk.f32.vlgmr.msra.gmra.mxu1 %vm330_vm4, %v328_v18  ;;  %v640_v19 = vstv %s1847_s0  ;;  %s2010_s0 = sld [smem:[#allocation6 + $0x21]] }
 0x272   : > { %v404_v20 = vpop.f32.mrf.mxu1 }
 0x273   : > { %v409_v21 = vrot.slane %v404_v20, 1 }
 0x274   : > { %v1410_v22 = vpop.f32.mrf.mxu1 }
 0x275   : > { %v411_v23 = vadd.f32 %v409_v21, %v404_v20  ;;  %v641_v20 = vstv %s1849_s1  ;;  %v716_v21 = vstv %s1851_s2  ;;  %v717_v22 = vstv %s1854_s3  ;;  %s2819_s1 = sld [smem:[#allocation32_spill]] }
 0x276   : > { %s2820_s2 = sld [smem:[#allocation33_spill]] }
 0x277   : > { %v1292_v24 = vmul.f32 -1.442695, %v411_v23  ;;  %v792_v23 = vstv %s1856_s8  ;;  %s2023_s3 = sld [smem:[#allocation6 + $0x52]] }
 0x279   : > { %1482 = vpow2.f32 %v1292_v24  ;;  %v793_v24 = vstv %s1858_s17  ;;  %s2822_s17 = sld [smem:[#allocation34_spill]] }
 0x286   : > { %v1483_v25 = vpop.eup %1482 }
 0x287   : > { %v415_v26 = vadd.f32 1.0, %v1483_v25  ;;  %v868_v25 = vstv %s2809_s29  ;;  %s2051_s29 = sld [smem:[#allocation6 + $0x53]] }
 0x289   : > { %1484 = vrcp.f32 %v415_v26 }
 0x28d   : > { %2825 = sst [smem:[#allocation28_spill]] %s2051_s29 }
 0x296   : > { %v1485_v28 = vpop.eup %1484 }
 0x297   : > { %v421_v29 = vrot.slane %v1485_v28, %v1789_v27  ;;  %v2006_v28 = vadd.s32 4294967293, %v1967_v10 }
 0x299   : > { %423 = vbcast.lane.b32.xlu1 %v421_v29, 256  ;;  %vm486_vm7 = vcmp.ge.s32.totalorder %v2006_v28, 0 }
 0x30b   : > { %v424_v30 = vpop.permute.xlu1 %423 }
 0x30c   : > { %v1792_v31 = vmul.f32 %v424_v30, %v228_v0  ;;  %v1794_v32 = vmul.f32 %v424_v30, %v229_v1  ;;  %v743_v0 = vstv %s1824_s30  ;;  %v744_v1 = vstv %s1827_s5  ;;  %s2811_s30 = sld [smem:[#allocation26_spill]] }
 0x30d   : > { %v745_v14 = vsel %vm637_vm5, %v743_v0, %v744_v1  ;;  %s2812_s5 = sld [smem:[#allocation27_spill]] }
 0x30e   : > { %2772 = vst [vmem:[#allocation22_spill] sm:$0xff] %v1792_v31  ;;  %2773 = vst [vmem:[#allocation23_spill] sm:$0xff] %v1794_v32  ;;  %v431_v33 = vrot.slane %v1792_v31, 4  ;;  %v437_v34 = vrot.slane %v1794_v32, 4  ;;  %2821 = sst [smem:[#allocation26_spill]] %s2023_s3 }
 0x30f   : > { %s2862_s3 = sld [smem:[#allocation55_spill]] }
 0x310   : > { %v432_v35 = vmax.f32 %v1792_v31, %v431_v33  ;;  %v438_v36 = vmax.f32 %v1794_v32, %v437_v34  ;;  %v444_v37 = vadd.f32 %v431_v33, %v1792_v31  ;;  %v450_v38 = vadd.f32 %v437_v34, %v1794_v32 }
 0x311   : > { %v2015_v34 = vadd.s32 4294967293, %v1969_v11  ;;  %v2214_v31 = vadd.s32 3, %v1967_v10  ;;  %v2217_v32 = vadd.s32 3, %v1969_v11 }
 0x312   : > { %v433_v39 = vrot.slane %v432_v35, 2  ;;  %v439_v40 = vrot.slane %v438_v36, 2  ;;  %v445_v41 = vrot.slane %v444_v37, 2  ;;  %v451_v42 = vrot.slane %v450_v38, 2 }
 0x313   : > { %v933_v29 = vstv %s2811_s30  ;;  %v934_v30 = vstv %s2812_s5  ;;  %s2072_s30 = sld [smem:[#allocation6 + $0x56]]  ;;  %vm487_vm8 = vcmp.ge.s32.totalorder %v2015_v34, 0 }
 0x314   : > { %v434_v43 = vmax.f32 %v432_v35, %v433_v39  ;;  %v440_v44 = vmax.f32 %v438_v36, %v439_v40  ;;  %v446_v45 = vadd.f32 %v445_v41, %v444_v37  ;;  %v452_v46 = vadd.f32 %v451_v42, %v450_v38 }
 0x315   : > { %v2019_v35 = vsel %vm637_vm5, %v640_v19, %v641_v20  ;;  %v1009_v36 = vstv %s2813_s26  ;;  %v2027_v38 = vsel %vm637_vm5, %v716_v21, %v717_v22  ;;  %v2031_v39 = vsel %vm637_vm5, %v792_v23, %v793_v24  ;;  %s2830_s26 = sld [smem:[#allocation37_spill]] }
 0x316   : > { %v435_v47 = vrot.slane %v434_v43, 1  ;;  %v441_v48 = vrot.slane %v440_v44, 1  ;;  %v447_v49 = vrot.slane %v446_v45, 1  ;;  %v453_v50 = vrot.slane %v452_v46, 1 }
 0x317   : > { %v2038_v41 = vadd.s32 4294967294, %v1967_v10  ;;  %v2044_v42 = vsel %vm637_vm5, %v933_v29, %v934_v30 }
 0x318   : > { %v448_v51 = vadd.f32 %v447_v49, %v446_v45  ;;  %v454_v52 = vadd.f32 %v453_v50, %v452_v46  ;;  %v436_v53 = vmax.f32 %v434_v43, %v435_v47  ;;  %v442_v54 = vmax.f32 %v440_v44, %v441_v48 }
 0x319   : > { %v2049_v45 = vadd.s32 4294967294, %v1969_v11  ;;  %v649_v47 = vstv %s2819_s1  ;;  %v650_v48 = vstv %s2820_s2  ;;  %v2060_v49 = vadd.s32 4294967295, %v1967_v10  ;;  %s2836_s2 = sld [smem:[#allocation41_spill]] }
 0x31a   : > { %v455_v55 = vmul.f32 0.125, %v448_v51  ;;  %v456_v56 = vmul.f32 0.125, %v454_v52  ;;  %v725_v50 = vstv %s2822_s17  ;;  %v2067_v52 = vadd.s32 4294967295, %v1969_v11  ;;  %s2838_s17 = sld [smem:[#allocation42_spill]] }
 0x31b   : > { %v2091_v60 = vsel %vm637_vm5, %v649_v47, %v650_v48  ;;  %vm511_vm9 = vcmp.ge.s32.totalorder %v2038_v41, 0  ;;  %vm512_vm10 = vcmp.ge.s32.totalorder %v2049_v45, 0  ;;  %vm533_vm12 = vcmp.ge.s32.totalorder %v2060_v49, 0 }
 0x31c   : > { %v1803_v57 = vsel %vm251_vm1, %v442_v54, %v456_v56  ;;  %v1806_v58 = vsel %vm251_vm1, %v436_v53, %v455_v55  ;;  %vm534_vm13 = vcmp.ge.s32.totalorder %v2067_v52, 0  ;;  %vm601_vm1 = vcmask 1031168  }
 0x31d   : > { %496 = vrot.lane.b32.xlu0 %v1803_v57, %s1603_s25  ;;  %494 = vrot.lane.b32.xlu1 %v1806_v58, %s1603_s25  ;;  %s1836_s25 = sld [smem:[#allocation6 + $0x57]]  ;;  %v2070_v53 = vmul.f32 %v669_v12, %v1803_v57  ;;  %v2079_v55 = vmul.f32 %v669_v12, %v1806_v58  ;;  %v2082_v56 = vmul.f32 %v821_v13, %v1803_v57 }
 0x31e   : > { %v2085_v59 = vmul.f32 %v821_v13, %v1806_v58  ;;  %v2094_v61 = vmul.f32 %v745_v14, %v1803_v57  ;;  %v2097_v62 = vmul.f32 %v745_v14, %v1806_v58  ;;  %v2100_v63 = vmul.f32 %v962_v7, %v1803_v57 }
 0x31f   : > { %2827 = vst [vmem:[#allocation58_spill] sm:$0xff] %v2070_v53  ;;  %2832 = vst [vmem:[#allocation59_spill] sm:$0xff] %v2082_v56  ;;  %v2109_v1 = vmul.f32 %v962_v7, %v1806_v58  ;;  %v943_v13 = vstv %s2836_s2  ;;  %v1018_v14 = vstv %s1898_s9  ;;  %v2132_v7 = vadd.s32 1, %v1967_v10  ;;  %s2850_s9 = sld [smem:[#allocation46_spill]] }
 0x320   : > { %2837 = vst [vmem:[#allocation60_spill] sm:$0xff] %v2094_v61  ;;  %2839 = vst [vmem:[#allocation61_spill] sm:$0xff] %v2100_v63 }
 0x321   : > { %597 = vrot.lane.b32.xlu0 %v1806_v58, %s1604_s28  ;;  %517 = vrot.lane.b32.xlu1 %v1806_v58, %s1605_s6  ;;  %vm570_vm15 = vcmp.lt.s32.totalorder %v2132_v7, 16 }
 0x323   : > { %v1037_v5 = vstv %s1836_s25  ;;  %s2003_s25 = sld [smem:[#allocation6 + $0x51]] }
 0x324   : > { %v1038_v15 = vsel %vm637_vm5, %v1036_v4, %v1037_v5  ;;  %v802_v5 = vstv %s2830_s26  ;;  %s2137_s26 = sld [smem:[#allocation6 + $0x5a]] }
 0x325   : > { %620 = vrot.lane.b32.xlu0 %v1806_v58, %s2702_s7  ;;  %519 = vrot.lane.b32.xlu1 %v1803_v57, %s1605_s6  ;;  %s1838_s6 = sld [smem:[#allocation6 + $0x2d]]  ;;  %v2112_v2 = vmul.f32 %v1038_v15, %v1803_v57  ;;  %v2117_v3 = vmul.f32 %v1038_v15, %v1806_v58  ;;  %v2135_v15 = vadd.s32 1, %v1969_v11 }
 0x326   : > { %s1842_s7 = sld [smem:[#allocation6 + $0x18]] }
 0x327   : > { %2841 = vst [vmem:[#allocation62_spill] sm:$0xff] %v2112_v2  ;;  %vm571_vm0 = vcmp.lt.s32.totalorder %v2135_v15, 16 }
 0x329   : > { %539 = vrot.lane.b32.xlu1 %v1806_v58, %s1607_s12  ;;  %2815 = sst [smem:[#allocation24_spill]] %s2003_s25 }
 0x32a   : > { %s2189_s25 = sld [smem:[#allocation6 + $0x5f]] }
 0x32b   : > { %v1112_v6 = vstv %s1838_s6  ;;  %s2816_s6 = sld [smem:[#allocation30_spill]] }
 0x32c   : > { %v1989_v16 = vsel %vm637_vm5, %v1112_v6, %v1113_v9  ;;  %v895_v17 = vstv %s1842_s7  ;;  %s2817_s7 = sld [smem:[#allocation31_spill]] }
 0x32d   : > { %541 = vrot.lane.b32.xlu1 %v1803_v57, %s1607_s12  ;;  %s1845_s12 = sld [smem:[#allocation6 + $0x49]]  ;;  %v2145_v19 = vmul.f32 %v1989_v16, %v1806_v58 }
 0x32e   : > { %2828 = sst [smem:[#allocation30_spill]] %s2072_s30 }
 0x32f   : > { %s2129_s30 = sld [smem:[#allocation6 + $0x29]] }
 0x331   : > { %574 = vrot.lane.b32.xlu1 %v1806_v58, %s1608_s24  ;;  %v1085_v43 = vstv %s2816_s6  ;;  %s2833_s6 = sld [smem:[#allocation39_spill]] }
 0x332   : > { %v1086_v44 = vstv %s2817_s7  ;;  %s2087_s7 = sld [smem:[#allocation6 + $0x27]] }
 0x333   : > { %v896_v18 = vstv %s1845_s12  ;;  %s2040_s12 = sld [smem:[#allocation6 + $0x22]]  ;;  %v2076_v54 = vsel %vm637_vm5, %v1085_v43, %v1086_v44 }
 0x334   : > { %v897_v33 = vsel %vm637_vm5, %v895_v17, %v896_v18  ;;  %v1019_v17 = vstv %s2838_s17  ;;  %v2141_v18 = vmul.f32 %v1989_v16, %v1803_v57  ;;  %s2856_s17 = sld [smem:[#allocation50_spill]] }
 0x335   : > { %576 = vrot.lane.b32.xlu1 %v1803_v57, %s1608_s24  ;;  %s1864_s24 = sld [smem:[#allocation6 + $0x46]]  ;;  %v2158_v22 = vmul.f32 %v897_v33, %v1806_v58  ;;  %v2161_v16 = vmul.f32 %v897_v33, %v1803_v57  ;;  %v2169_v24 = vsel %vm637_vm5, %v1018_v14, %v1019_v17  ;;  %v2175_v58 = vadd.s32 2, %v1969_v11 }
 0x336   : > { %2849 = vst [vmem:[#allocation63_spill] sm:$0xff] %v2141_v18  ;;  %v676_v33 = vstv %s2850_s9 }
 0x337   : > { %v878_v9 = vstv %s2833_s6  ;;  %s2851_s6 = sld [smem:[#allocation47_spill]]  ;;  %2854 = vst [vmem:[#allocation64_spill] sm:$0xff] %v2158_v22  ;;  %2855 = vst [vmem:[#allocation65_spill] sm:$0xff] %v2161_v16  ;;  %vm594_vm3 = vcmp.lt.s32.totalorder %v2175_v58, 16 }
 0x338   : > { %2834 = sst [smem:[#allocation31_spill]] %s2087_s7 }
 0x339   : > { %599 = vrot.lane.b32.xlu1 %v1803_v57, %s1604_s28  ;;  %s1872_s28 = sld [smem:[#allocation6 + $0x54]] }
 0x33a   : > { %2824 = sst [smem:[#allocation27_spill]] %s2040_s12  ;;  %v694_v44 = vstv %s2856_s17 }
 0x33b   : > { %2776 = sst [smem:[#allocation25_spill]] %s1864_s24 }
 0x33c   : > { %s1886_s24 = sld [smem:[#allocation6 + $0xf]] }
 0x33d   : > { %622 = vrot.lane.b32.xlu1 %v1803_v57, %s2775_s27  ;;  %s1884_s27 = sld [smem:[#allocation6 + $0x39]] }
 0x33e   : > { %s2810_s10 = sld [smem:[#allocation25_spill]] }
 0x33f   : > { %2780 = sst [smem:[#allocation29_spill]] %s1872_s28 }
 0x340   : > { %s1894_s28 = sld [smem:[#allocation6 + $0x1d]] }
 0x341   : > { %s2814_s20 = sld [smem:[#allocation29_spill]] }
 0x342   : > { %2787 = sst [smem:[#allocation36_spill]] %s1886_s24 }
 0x343   : > { %2786 = sst [smem:[#allocation35_spill]] %s1884_s27 }
 0x344   : > { %s1906_s27 = sld [smem:[#allocation6 + $0x2]]  ;;  %v869_v26 = vstv %s2810_s10 }
 0x345   : > { %s1908_s24 = sld [smem:[#allocation6 + $0x33]]  ;;  %v2035_v40 = vsel %vm637_vm5, %v868_v25, %v869_v26  ;;  %v2172_v25 = vadd.s32 2, %v1967_v10  ;;  %v1095_v26 = vstv %s1904_s16 }
 0x346   : > { %2791 = sst [smem:[#allocation40_spill]] %s1894_s28 }
 0x347   : > { %s1916_s28 = sld [smem:[#allocation6 + $0x36]]  ;;  %v1010_v37 = vstv %s2814_s20  ;;  %vm593_vm2 = vcmp.lt.s32.totalorder %v2172_v25, 16 }
 0x348   : > { %2818 = sst [smem:[#allocation25_spill]] %s2010_s0  ;;  %v2055_v46 = vsel %vm637_vm5, %v1009_v36, %v1010_v37  ;;  %v677_v36 = vstv %s1912_s22  ;;  %v685_v37 = vstv %s2851_s6 }
 0x349   : > { %s2823_s8 = sld [smem:[#allocation35_spill]]  ;;  %v2227_v16 = vsel %vm637_vm5, %v676_v33, %v677_v36 }
 0x34a   : > { %2795 = sst [smem:[#allocation44_spill]] %s1906_s27  ;;  %2865 = vst [vmem:[#allocation66_spill] sm:$0xff] %v2227_v16 }
 0x34b   : > { %2796 = sst [smem:[#allocation45_spill]] %s1908_s24 }
 0x34c   : > { %s1924_s27 = sld [smem:[#allocation6 + $0x41]] }
 0x34d   : > { %2799 = sst [smem:[#allocation48_spill]] %s1916_s28 }
 0x34e   : > { %s1926_s24 = sld [smem:[#allocation6 + $0x12]] }
 0x34f   : > { %s1932_s28 = sld [smem:[#allocation6 + $0x44]]  ;;  %v726_v51 = vstv %s2823_s8 }
 0x350   : > { %s2062_s10 = sld [smem:[#allocation6 + $0x25]]  ;;  %v2106_v0 = vsel %vm637_vm5, %v725_v50, %v726_v51 }
 0x351   : > { %s2829_s5 = sld [smem:[#allocation36_spill]]  ;;  %v2907_v8 = vld [vmem:[#allocation66_spill] sm:$0xff] }
 0x352   : > { %2803 = sst [smem:[#allocation52_spill]] %s1924_s27 }
 0x353   : > { %s1940_s27 = sld [smem:[#allocation6 + $0x3a]] }
 0x354   : > { %2804 = sst [smem:[#allocation53_spill]] %s1926_s24 }
 0x355   : > { %2805 = sst [smem:[#allocation54_spill]] %s1932_s28 }
 0x356   : > { %s1942_s24 = sld [smem:[#allocation6 + $0xb]] }
 0x357   : > { %s1946_s28 = sld [smem:[#allocation6 + $0x3c]]  ;;  %v801_v4 = vstv %s2829_s5 }
 0x358   : > { %2826 = sst [smem:[#allocation29_spill]] %s2062_s10  ;;  %v2149_v20 = vsel %vm637_vm5, %v801_v4, %v802_v5  ;;  %v829_v4 = vstv %s1928_s18  ;;  %v837_v5 = vstv %s1930_s15 }
 0x359   : > { %2807 = sst [smem:[#allocation56_spill]] %s1940_s27 }
 0x35a   : > { %s1956_s27 = sld [smem:[#allocation6 + $0x3d]] }
 0x35b   : > { %s2831_s20 = sld [smem:[#allocation38_spill]] }
 0x35c   : > { %2808 = sst [smem:[#allocation57_spill]] %s1942_s24 }
 0x35d   : > { %s1960_s24 = sld [smem:[#allocation6 + $0xd]] }
 0x35e   : > { %s2835_s1 = sld [smem:[#allocation40_spill]] }
 0x35f   : > { %s2102_s8 = sld [smem:[#allocation6 + $0x58]] }
 0x360   : > { %s2114_s7 = sld [smem:[#allocation6 + $0x28]] }
 0x361   : > { %v877_v6 = vstv %s2831_s20  ;;  %2844 = sst [smem:[#allocation35_spill]] %s2129_s30 }
 0x362   : > { %s2845_s10 = sld [smem:[#allocation43_spill]]  ;;  %v2153_v21 = vsel %vm637_vm5, %v877_v6, %v878_v9  ;;  %v846_v9 = vstv %s1934_s4 }
 0x363   : > { %s2846_s5 = sld [smem:[#allocation44_spill]] }
 0x364   : > { %v942_v12 = vstv %s2835_s1  ;;  %2847 = sst [smem:[#allocation36_spill]] %s2137_s26 }
 0x365   : > { %2840 = sst [smem:[#allocation32_spill]] %s2102_s8  ;;  %v2165_v23 = vsel %vm637_vm5, %v942_v12, %v943_v13  ;;  %v847_v12 = vstv %s2862_s3  ;;  %v734_v13 = vstv %s1938_s19 }
 0x366   : > { %2842 = sst [smem:[#allocation33_spill]] %s2114_s7 }
 0x367   : > { %s2123_s8 = sld [smem:[#allocation6 + $0x59]] }
 0x368   : > { %s2848_s20 = sld [smem:[#allocation45_spill]]  ;;  %v1094_v57 = vstv %s2845_s10 }
 0x369   : > { %s2155_s1 = sld [smem:[#allocation6 + $0x2c]]  ;;  %v658_v29 = vstv %s2846_s5  ;;  %v2211_v17 = vsel %vm637_vm5, %v1094_v57, %v1095_v26 }
 0x36a   : > { %s2853_s2 = sld [smem:[#allocation48_spill]] }
 0x36b   : > { %s2857_s26 = sld [smem:[#allocation51_spill]] }
 0x36c   : > { %s2858_s30 = sld [smem:[#allocation49_spill]] }
 0x36d   : > { %2843 = sst [smem:[#allocation34_spill]] %s2123_s8 }
 0x36e   : > { %s2177_s8 = sld [smem:[#allocation6 + $0x5d]]  ;;  %v659_v30 = vstv %s2848_s20 }
 0x36f   : > { %2852 = sst [smem:[#allocation37_spill]] %s2155_s1  ;;  %v2221_v27 = vsel %vm637_vm5, %v658_v29, %v659_v30  ;;  %v2253_v30 = vsel %vm637_vm5, %v846_v9, %v847_v12 }
 0x370   : > { %s2859_s1 = sld [smem:[#allocation52_spill]]  ;;  %v686_v43 = vstv %s2853_s2  ;;  %2870 = vst [vmem:[#allocation71_spill] sm:$0xff] %v2253_v30 }
 0x371   : > { %s2860_s7 = sld [smem:[#allocation53_spill]]  ;;  %v695_v47 = vstv %s2857_s26  ;;  %v2231_v10 = vsel %vm637_vm5, %v685_v37, %v686_v43  ;;  %v753_v37 = vstv %s1946_s28  ;;  %v761_v43 = vstv %s1952_s23 }
 0x372   : > { %s2861_s29 = sld [smem:[#allocation54_spill]]  ;;  %v810_v48 = vstv %s2858_s30  ;;  %2866 = vst [vmem:[#allocation67_spill] sm:$0xff] %v2231_v10  ;;  %v2235_v11 = vsel %vm637_vm5, %v694_v44, %v695_v47  ;;  %v762_v44 = vstv %s1956_s27  ;;  %v770_v47 = vstv %s1960_s24 }
 0x373   : > { %s2183_s12 = sld [smem:[#allocation6 + $0x2e]]  ;;  %2867 = vst [vmem:[#allocation68_spill] sm:$0xff] %v2235_v11  ;;  %v2303_v61 = vsel %vm637_vm5, %v761_v43, %v762_v44 }
 0x374   : > { %s2863_s0 = sld [smem:[#allocation56_spill]]  ;;  %v1104_v2 = vstv %s2177_s8  ;;  %2886 = vst [vmem:[#allocation73_spill] sm:$0xff] %v2303_v61  ;;  %s1612_s8 = smov 112  }
 0x375   : > { %s2195_s16 = sld [smem:[#allocation6 + $0x2f]] }
 0x376   : > { %v811_v50 = vstv %s2859_s1  ;;  %s2201_s10 = sld [smem:[#allocation6 + $0x60]] }
 0x377   : > { %v828_v51 = vstv %s2860_s7  ;;  %s2207_s22 = sld [smem:[#allocation6 + $0x30]]  ;;  %v2239_v57 = vsel %vm637_vm5, %v810_v48, %v811_v50  ;;  %v771_v48 = vstv %s1971_s11  ;;  %v951_v50 = vstv %s1979_s13 }
 0x378   : > { %v838_v6 = vstv %s2861_s29  ;;  %s2864_s5 = sld [smem:[#allocation57_spill]]  ;;  %v2245_v26 = vsel %vm637_vm5, %v828_v51, %v829_v4  ;;  %v952_v51 = vstv %s1983_s14  ;;  %v969_v4 = vstv %s1997_s21  ;;  %s1609_s21 = smov 48  }
 0x379   : > { %s2223_s4 = sld [smem:[#allocation6 + $0x61]]  ;;  %2868 = vst [vmem:[#allocation69_spill] sm:$0xff] %v2245_v26  ;;  %v2249_v29 = vsel %vm637_vm5, %v837_v5, %v838_v6  ;;  %v2307_v56 = vsel %vm637_vm5, %v770_v47, %v771_v48  ;;  %v2311_v53 = vsel %vm637_vm5, %v951_v50, %v952_v51  ;;  %v1121_v51 = vstv %s2183_s12  ;;  %s1611_s12 = smov 32  }
 0x37a   : > { %v735_v14 = vstv %s2863_s0  ;;  %s2241_s15 = sld [smem:[#allocation6 + $0x17]]  ;;  %2869 = vst [vmem:[#allocation70_spill] sm:$0xff] %v2249_v29  ;;  %2887 = vst [vmem:[#allocation74_spill] sm:$0xff] %v2307_v56 }
 0x37b   : > { %v2257_v33 = vsel %vm637_vm5, %v734_v13, %v735_v14  ;;  %s2871_s18 = sld [smem:[#allocation24_spill]]  ;;  %v2913_v58 = vld [vmem:[#allocation73_spill] sm:$0xff] }
 0x37c   : > { %s2259_s19 = sld [smem:[#allocation6 + $0x48]] }
 0x37d   : > { %s2872_s0 = sld [smem:[#allocation25_spill]] }
 0x37e   : > { %v752_v36 = vstv %s2864_s5  ;;  %s2873_s3 = sld [smem:[#allocation26_spill]] }
 0x37f   : > { %s2874_s29 = sld [smem:[#allocation27_spill]]  ;;  %v2299_v63 = vsel %vm637_vm5, %v752_v36, %v753_v37 }
 0x380   : > { %s2875_s30 = sld [smem:[#allocation28_spill]]  ;;  %2885 = vst [vmem:[#allocation72_spill] sm:$0xff] %v2299_v63  ;;  %v2908_v7 = vld [vmem:[#allocation69_spill] sm:$0xff] }
 0x381   : > { %s2265_s7 = sld [smem:[#allocation6 + $0x19]]  ;;  %v970_v5 = vstv %s2871_s18 }
 0x382   : > { %s2876_s26 = sld [smem:[#allocation29_spill]]  ;;  %v2318_v36 = vsel %vm637_vm5, %v969_v4, %v970_v5  ;;  %v1122_v4 = vstv %s2189_s25  ;;  %v1130_v5 = vstv %s2195_s16  ;;  %s1610_s25 = smov 16  }
 0x383   : > { %s2877_s20 = sld [smem:[#allocation30_spill]]  ;;  %v978_v6 = vstv %s2872_s0  ;;  %2888 = vst [vmem:[#allocation75_spill] sm:$0xff] %v2318_v36  ;;  %s1613_s16 = smov 96  }
 0x384   : > { %s2878_s9 = sld [smem:[#allocation31_spill]]  ;;  %v979_v9 = vstv %s2873_s3 }
 0x385   : > { %s2879_s6 = sld [smem:[#allocation32_spill]]  ;;  %v987_v12 = vstv %s2874_s29  ;;  %v2322_v37 = vsel %vm637_vm5, %v978_v6, %v979_v9  ;;  %v1140_v6 = vstv %s2223_s4 }
 0x386   : > { %s2880_s1 = sld [smem:[#allocation33_spill]]  ;;  %v988_v13 = vstv %s2875_s30  ;;  %2889 = vst [vmem:[#allocation76_spill] sm:$0xff] %v2322_v37 }
 0x387   : > { %s2271_s2 = sld [smem:[#allocation6 + $0x4a]]  ;;  %v2326_v43 = vsel %vm637_vm5, %v987_v12, %v988_v13  ;;  %v904_v13 = vstv %s2265_s7 }
 0x388   : > { %s2881_s28 = sld [smem:[#allocation34_spill]]  ;;  %v1027_v14 = vstv %s2876_s26  ;;  %2890 = vst [vmem:[#allocation77_spill] sm:$0xff] %v2326_v43 }
 0x389   : > { %s2882_s23 = sld [smem:[#allocation35_spill]]  ;;  %v1028_v22 = vstv %s2877_s20 }
 0x38a   : > { %s2883_s27 = sld [smem:[#allocation36_spill]]  ;;  %v1045_v30 = vstv %s2878_s9  ;;  %v2330_v44 = vsel %vm637_vm5, %v1027_v14, %v1028_v22  ;;  %s1615_s9 = smov [#allocation7]  }
 0x38b   : > { %s2884_s17 = sld [smem:[#allocation37_spill]]  ;;  %v1046_v11 = vstv %s2879_s6  ;;  %s1533_s6 = sshll.u32 %s1615_s9, 4  ;;  %s1534_s6 = int_to_ptr.vmem [resolvable:$false] %s1533_s6 }
 0x38c   : > { %s2279_s24 = sld [smem:[#allocation6 + $0x1a]]  ;;  %v1054_v29 = vstv %s2880_s1  ;;  %v2334_v47 = vsel %vm637_vm5, %v1045_v30, %v1046_v11  ;;  %v1131_v11 = vstv %s2201_s10  ;;  %v1139_v30 = vstv %s2207_s22  ;;  %s1614_s10 = smov 80  }
 0x38d   : > { %s2285_s11 = sld [smem:[#allocation6 + $0x4b]]  ;;  %2891 = vst [vmem:[#allocation78_spill] sm:$0xff] %v2334_v47  ;;  %s1535_s1 = scalar_lea.vmem %s1534_s6, 512 }
 0x38e   : > { %v1055_v10 = vstv %s2881_s28  ;;  %s2295_s13 = sld [smem:[#allocation6 + $0x1b]] }
 0x38f   : > { %v1063_v26 = vstv %s2882_s23  ;;  %s2313_s14 = sld [smem:[#allocation6 + $0x4c]]  ;;  %v2338_v48 = vsel %vm637_vm5, %v1054_v29, %v1055_v10  ;;  %v886_v10 = vstv %s2241_s15  ;;  %v887_v29 = vstv %s2259_s19  ;;  %v497_v9 = vpop.permute.xlu0 %496  ;;  %v495_v12 = vpop.permute.xlu1 %494 }
 0x390   : > { %v1064_v16 = vstv %s2883_s27  ;;  %2892 = vst [vmem:[#allocation79_spill] sm:$0xff] %v2338_v48  ;;  %v2369_v48 = vsel %vm637_vm5, %v1130_v5, %v1131_v11  ;;  %s2929_s22 = sld [smem:[#allocation15_spill]] }
 0x391   : > { %v1103_v18 = vstv %s2884_s17  ;;  %v2342_v50 = vsel %vm637_vm5, %v1063_v26, %v1064_v16  ;;  %v905_v16 = vstv %s2271_s2  ;;  %2895 = vst [vmem:[#allocation82_spill] sm:$0xff] %v2369_v48  ;;  %s2930_s5 = sld [smem:[#allocation20_spill]] }
 0x392   : > { %2893 = vst [vmem:[#allocation80_spill] sm:$0xff] %v2342_v50  ;;  %v2346_v22 = vsel %vm637_vm5, %v1103_v18, %v1104_v2  ;;  %v913_v26 = vstv %s2279_s24  ;;  %v499_v2 = vsel %vm498_vm6, %v495_v12, %v497_v9  ;;  %v502_v18 = vsel %vm498_vm6, 0.0, %v495_v12  ;;  %s2931_s4 = sld [smem:[#allocation19_spill]] }
 0x393   : > { %v914_v14 = vstv %s2285_s11  ;;  %v2365_v50 = vsel %vm637_vm5, %v1121_v51, %v1122_v4  ;;  %v507_v47 = vsel %vm486_vm7, %v502_v18, 0.0  ;;  %v508_v43 = vsel %vm487_vm8, %v499_v2, 0.0  ;;  %s2936_s30 = sld [smem:[#allocation90_spill]] }
 0x394   : > { %2894 = vst [vmem:[#allocation81_spill] sm:$0xff] %v2365_v50  ;;  %v2377_v9 = vsel %vm637_vm5, %v1139_v30, %v1140_v6  ;;  %v2381_v12 = vsel %vm637_vm5, %v886_v10, %v887_v29  ;;  %v2386_v51 = vsel %vm637_vm5, %v904_v13, %v905_v16  ;;  %v2390_v28 = vsel %vm637_vm5, %v913_v26, %v914_v14  ;;  %v518_v10 = vpop.permute.xlu1 %517 }
 0x395   : > { %2896 = vst [vmem:[#allocation83_spill] sm:$0xff] %v2377_v9  ;;  %2897 = vst [vmem:[#allocation84_spill] sm:$0xff] %v2386_v51  ;;  %v643_v5 = vmul.f32 %v2019_v35, %v507_v47  ;;  %v644_v11 = vmul.f32 %v2019_v35, %v508_v43  ;;  %v719_v30 = vmul.f32 %v2027_v38, %v507_v47  ;;  %v524_v18 = vsel %vm330_vm4, 0.0, %v518_v10 }
 0x396   : > { %2898 = vst [vmem:[#allocation85_spill] sm:$0xff] %v2390_v28  ;;  %v720_v6 = vmul.f32 %v2027_v38, %v508_v43  ;;  %v795_v29 = vmul.f32 %v2031_v39, %v507_v47  ;;  %v796_v13 = vmul.f32 %v2031_v39, %v508_v43  ;;  %v2401_v16 = vmul.f32 %v2035_v40, %v507_v47  ;;  %s1396_s15 = sshll.u32 %s2929_s22, 8 }
 0x397   : > { %v2404_v26 = vmul.f32 %v2035_v40, %v508_v43  ;;  %v936_v14 = vmul.f32 %v2044_v42, %v507_v47  ;;  %v937_v2 = vmul.f32 %v2044_v42, %v508_v43  ;;  %v1012_v35 = vmul.f32 %v2055_v46, %v507_v47  ;;  %s2932_s18 = sshll.u32 %s2930_s5, 4  ;;  %s1182_s26 = scalar_lea.sflag [#allocation4], %s2930_s5 }
 0x398   : > { %v1013_v38 = vmul.f32 %v2055_v46, %v508_v43  ;;  %v1088_v34 = vmul.f32 %v2076_v54, %v507_v47  ;;  %v1089_v39 = vmul.f32 %v2076_v54, %v508_v43  ;;  %v529_v4 = vsel %vm511_vm9, %v524_v18, 0.0  ;;  %v520_v9 = vpop.permute.xlu1 %519  ;;  %s227_s19 = scalar_lea.vmem [#allocation7], %s2932_s18  ;;  %p2937_p11 = scmp.ne.s32.totalorder %s2931_s4, 0 }
 0x399   : > { %v652_v40 = vmul.f32 %v2091_v60, %v529_v4  ;;  %v728_v28 = vmul.f32 %v2106_v0, %v529_v4  ;;  %v804_v42 = vmul.f32 %v2149_v20, %v529_v4  ;;  %v2420_v51 = vmul.f32 %v2153_v21, %v529_v4  ;;  %s1196_s0 = sshll.u32 %s227_s19, 4  ;;  %s2655_s7 = scalar_lea.hbm %s2936_s30, %s1396_s15  ;;  %s1197_s0 = int_to_ptr.vmem [resolvable:$true] %s1196_s0 }
 0x39a   : > { %v945_v46 = vmul.f32 %v2165_v23, %v529_v4  ;;  %v1021_v47 = vmul.f32 %v2169_v24, %v529_v4  ;;  %v1097_v54 = vmul.f32 %v2211_v17, %v529_v4  ;;  %v521_v41 = vsel %vm330_vm4, %v518_v10, %v520_v9  ;;  %s1529_s20 = scalar_lea.vmem %s1197_s0, 256  ;;  %p1536_p2 = scmp.lt.s32.totalorder %s1197_s0, %s1534_s6 }
 0x39b   : > { %v530_v43 = vsel %vm512_vm10, %v521_v41, 0.0  ;;  %v654_v18 = vadd.f32 %v652_v40, %v643_v5  ;;  %v806_v48 = vadd.f32 %v804_v42, %v795_v29  ;;  %v730_v50 = vadd.f32 %v728_v28, %v719_v30  ;;  %p1530_p9 = scmp.ne.s32.totalorder %s1197_s0, %s1529_s20  ;;  %p1537_p1 = scmp.lt.s32.totalorder %s1535_s1, %s1529_s20 }
 0x39c   : > { %v653_v37 = vmul.f32 %v2091_v60, %v530_v43  ;;  %v729_v56 = vmul.f32 %v2106_v0, %v530_v43  ;;  %v805_v61 = vmul.f32 %v2149_v20, %v530_v43  ;;  %v2432_v36 = vmul.f32 %v2153_v21, %v530_v43  ;;  %v540_v45 = vpop.permute.xlu1 %539 }
 0x39d   : > { %v946_v63 = vmul.f32 %v2165_v23, %v530_v43  ;;  %v1022_v4 = vmul.f32 %v2169_v24, %v530_v43  ;;  %v1098_v9 = vmul.f32 %v2211_v17, %v530_v43  ;;  %v947_v10 = vadd.f32 %v945_v46, %v936_v14  ;;  %p1531_p13 = pnand %p1530_p9, %p2937_p11  ;;  %p1538_p0 = por %p1537_p1, %p1536_p2 }
 0x39e   : > { %v547_v5 = vsel %vm543_vm11, 0.0, %v540_v45  ;;  %v655_v28 = vadd.f32 %v653_v37, %v644_v11  ;;  %v807_v30 = vadd.f32 %v805_v61, %v796_v13  ;;  %v731_v60 = vadd.f32 %v729_v56, %v720_v6 }
 0x39f   : > { %v2440_v0 = vsel %vm533_vm12, %v547_v5, 0.0  ;;  %v948_v20 = vadd.f32 %v946_v63, %v937_v2  ;;  %v1024_v21 = vadd.f32 %v1022_v4, %v1013_v38  ;;  %v1023_v29 = vadd.f32 %v1021_v47, %v1012_v35  ;;  %v2902_v5 = vld [vmem:[#allocation61_spill] sm:$0xff]  ;;  %p1532_p10 = pneg %p1531_p13 }
 0x3a0   : > { %v661_v23 = vmul.f32 %v2221_v27, %v2440_v0  ;;  %v813_v24 = vmul.f32 %v2239_v57, %v2440_v0  ;;  %v737_v56 = vmul.f32 %v2257_v33, %v2440_v0  ;;  %v954_v49 = vmul.f32 %v2311_v53, %v2440_v0  ;;  %v542_v61 = vpop.permute.xlu1 %541 }
 0x3a1   : > { %v1030_v63 = vmul.f32 %v2330_v44, %v2440_v0  ;;  %v1100_v17 = vadd.f32 %v1098_v9, %v1089_v39  ;;  %v1099_v37 = vadd.f32 %v1097_v54, %v1088_v34  ;;  %v1106_v11 = vmul.f32 %v2346_v22, %v2440_v0  ;;  %p1539_p3 = pnand %p1538_p0, %p1532_p10 }
 0x3a2   : > { %v544_v6 = vsel %vm543_vm11, %v540_v45, %v542_v61  ;;  %v663_v13 = vadd.f32 %v661_v23, %v654_v18  ;;  %v815_v14 = vadd.f32 %v813_v24, %v806_v48  ;;  %v739_v2 = vadd.f32 %v737_v56, %v730_v50  ;;  %v598_v24 = vpop.permute.xlu0 %597 }
 0x3a3   : > { %v2459_v35 = vsel %vm534_vm13, %v544_v6, 0.0  ;;  %v956_v38 = vadd.f32 %v954_v49, %v947_v10  ;;  %v1032_v40 = vadd.f32 %v1030_v63, %v1023_v29  ;;  %v1108_v42 = vadd.f32 %v1106_v11, %v1099_v37  ;;  %v2903_v29 = vld [vmem:[#allocation62_spill] sm:$0xff]  ;;  %v2909_v6 = vld [vmem:[#allocation72_spill] sm:$0xff] }
 0x3a4   : > { %v662_v34 = vmul.f32 %v2221_v27, %v2459_v35  ;;  %v672_v39 = vadd.f32 %v2079_v55, %v663_v13  ;;  %v814_v48 = vmul.f32 %v2239_v57, %v2459_v35  ;;  %v824_v52 = vadd.f32 %v2085_v59, %v815_v14  ;;  %v575_v50 = vpop.permute.xlu1 %574  ;;  %v2910_v14 = vld [vmem:[#allocation75_spill] sm:$0xff] }
 0x3a5   : > { %v738_v46 = vmul.f32 %v2257_v33, %v2459_v35  ;;  %v748_v47 = vadd.f32 %v2097_v62, %v739_v2  ;;  %v955_v54 = vmul.f32 %v2311_v53, %v2459_v35  ;;  %v2475_v41 = vadd.f32 %v2109_v1, %v956_v38  ;;  %v2899_v1 = vld [vmem:[#allocation58_spill] sm:$0xff] }
 0x3a6   : > { %v664_v27 = vadd.f32 %v662_v34, %v655_v28  ;;  %v816_v43 = vadd.f32 %v814_v48, %v807_v30  ;;  %v1031_v55 = vmul.f32 %v2330_v44, %v2459_v35  ;;  %v2480_v57 = vadd.f32 %v2117_v3, %v1032_v40  ;;  %v2900_v44 = vld [vmem:[#allocation59_spill] sm:$0xff] }
 0x3a7   : > { %vm624_vm4 = vcmask 1022976   ;;  %v740_v59 = vadd.f32 %v738_v46, %v731_v60  ;;  %v957_v18 = vadd.f32 %v955_v54, %v948_v20  ;;  %v1107_v62 = vmul.f32 %v2346_v22, %v2459_v35  ;;  %v2901_v22 = vld [vmem:[#allocation60_spill] sm:$0xff] }
 0x3a8   : > { %v2485_v53 = vadd.f32 %v2145_v19, %v1108_v42  ;;  %vm616_vm6 = vcmp.lt.s32.totalorder %v2214_v31, 16  ;;  %vm617_vm7 = vcmp.lt.s32.totalorder %v2217_v32, 16  ;;  %v673_v33 = vadd.f32 %v2899_v1, %v664_v27  ;;  %v577_v45 = vpop.permute.xlu1 %576 }
 0x3a9   : > { %v825_v3 = vadd.f32 %v2900_v44, %v816_v43  ;;  %v1033_v4 = vadd.f32 %v1031_v55, %v1024_v21  ;;  %v2493_v9 = vadd.f32 %v2420_v51, %v2401_v16  ;;  %v749_v10 = vadd.f32 %v2901_v22, %v740_v59  ;;  %v2911_v43 = vld [vmem:[#allocation67_spill] sm:$0xff] }
 0x3aa   : > { %v966_v28 = vadd.f32 %v2902_v5, %v957_v18  ;;  %v1109_v19 = vadd.f32 %v1107_v62, %v1100_v17  ;;  %v2499_v30 = vadd.f32 %v2432_v36, %v2404_v26  ;;  %v579_v60 = vsel %vm578_vm14, %v575_v50, %v577_v45  ;;  %v2906_v26 = vld [vmem:[#allocation63_spill] sm:$0xff]  ;;  %v2912_v18 = vld [vmem:[#allocation70_spill] sm:$0xff] }
 0x3ab   : > { %v582_v20 = vsel %vm578_vm14, %v577_v45, 0.0  ;;  %v2504_v21 = vadd.f32 %v2903_v29, %v1033_v4  ;;  %v2904_v23 = vstv %s2313_s14  ;;  %v2905_v51 = vstv %s2295_s13 }
 0x3ac   : > { %v2512_v16 = vsel %vm637_vm5, %v2905_v51, %v2904_v23  ;;  %v2516_v56 = vsel %vm570_vm15, %v579_v60, 0.0  ;;  %v2520_v36 = vsel %vm571_vm0, %v582_v20, 0.0  ;;  %v2523_v49 = vadd.f32 %v2906_v26, %v1109_v19  ;;  %v600_v11 = vpop.permute.xlu1 %599  ;;  %v2915_v51 = vld [vmem:[#allocation71_spill] sm:$0xff] }
 0x3ad   : > { %v2527_v61 = vmul.f32 %v2381_v12, %v2440_v0  ;;  %v680_v63 = vmul.f32 %v2907_v8, %v2520_v36  ;;  %v679_v17 = vmul.f32 %v2907_v8, %v2516_v56  ;;  %v832_v37 = vmul.f32 %v2908_v7, %v2520_v36  ;;  %v2916_v8 = vld [vmem:[#allocation74_spill] sm:$0xff] }
 0x3ae   : > { %v831_v15 = vmul.f32 %v2908_v7, %v2516_v56  ;;  %v756_v13 = vmul.f32 %v2909_v6, %v2520_v36  ;;  %v755_v0 = vmul.f32 %v2909_v6, %v2516_v56  ;;  %v973_v2 = vmul.f32 %v2910_v14, %v2520_v36 }
 0x3af   : > { %v972_v38 = vmul.f32 %v2910_v14, %v2516_v56  ;;  %v602_v40 = vsel %vm601_vm1, %v598_v24, %v600_v11  ;;  %v605_v42 = vsel %vm601_vm1, %v600_v11, 0.0  ;;  %v682_v34 = vadd.f32 %v680_v63, %v673_v33  ;;  %v2917_v14 = vld [vmem:[#allocation76_spill] sm:$0xff] }
 0x3b0   : > { %v681_v48 = vadd.f32 %v679_v17, %v672_v39  ;;  %v2549_v50 = vsel %vm593_vm2, %v602_v40, 0.0  ;;  %v2553_v46 = vsel %vm594_vm3, %v605_v42, 0.0  ;;  %v834_v54 = vadd.f32 %v832_v37, %v825_v3  ;;  %v621_v39 = vpop.permute.xlu0 %620  ;;  %v623_v1 = vpop.permute.xlu1 %622  ;;  %v2918_v42 = vld [vmem:[#allocation77_spill] sm:$0xff] }
 0x3b1   : > { %v833_v27 = vadd.f32 %v831_v15, %v824_v52  ;;  %v689_v55 = vmul.f32 %v2911_v43, %v2553_v46  ;;  %v688_v59 = vmul.f32 %v2911_v43, %v2549_v50  ;;  %v841_v62 = vmul.f32 %v2912_v18, %v2553_v46 }
 0x3b2   : > { %v840_v25 = vmul.f32 %v2912_v18, %v2549_v50  ;;  %v758_v33 = vadd.f32 %v756_v13, %v749_v10  ;;  %v765_v44 = vmul.f32 %v2913_v58, %v2553_v46  ;;  %v757_v3 = vadd.f32 %v755_v0, %v748_v47  ;;  %v2914_v47 = vld [vmem:[#allocation68_spill] sm:$0xff] }
 0x3b3   : > { %v764_v52 = vmul.f32 %v2913_v58, %v2549_v50  ;;  %v625_v4 = vsel %vm624_vm4, %v621_v39, %v623_v1  ;;  %v628_v45 = vsel %vm624_vm4, %v623_v1, 0.0  ;;  %v691_v22 = vadd.f32 %v689_v55, %v682_v34  ;;  %v2920_v55 = vld [vmem:[#allocation79_spill] sm:$0xff]  ;;  %v2922_v58 = vld [vmem:[#allocation81_spill] sm:$0xff] }
 0x3b4   : > { %v690_v5 = vadd.f32 %v688_v59, %v681_v48  ;;  %v2571_v19 = vsel %vm616_vm6, %v625_v4, 0.0  ;;  %v2575_v10 = vsel %vm617_vm7, %v628_v45, 0.0  ;;  %v843_v60 = vadd.f32 %v841_v62, %v834_v54  ;;  %v2921_v62 = vld [vmem:[#allocation80_spill] sm:$0xff]  ;;  %v2923_v4 = vld [vmem:[#allocation82_spill] sm:$0xff] }
 0x3b5   : > { %v842_v20 = vadd.f32 %v840_v25, %v833_v27  ;;  %v698_v29 = vmul.f32 %v2914_v47, %v2575_v10  ;;  %v697_v23 = vmul.f32 %v2914_v47, %v2571_v19  ;;  %v850_v24 = vmul.f32 %v2915_v51, %v2575_v10 }
 0x3b6   : > { %v849_v31 = vmul.f32 %v2915_v51, %v2571_v19  ;;  %v767_v26 = vadd.f32 %v765_v44, %v758_v33  ;;  %v774_v32 = vmul.f32 %v2916_v8, %v2575_v10  ;;  %v766_v63 = vadd.f32 %v764_v52, %v757_v3 }
 0x3b7   : > { %v773_v17 = vmul.f32 %v2916_v8, %v2571_v19  ;;  %v700_v7 = vadd.f32 %v698_v29, %v691_v22  ;;  %v699_v37 = vadd.f32 %v697_v23, %v690_v5  ;;  %v852_v15 = vadd.f32 %v850_v24, %v843_v60 }
 0x3b8   : > { %v851_v11 = vadd.f32 %v849_v31, %v842_v20  ;;  %v776_v6 = vadd.f32 %v774_v32, %v767_v26  ;;  %v975_v0 = vadd.f32 %v973_v2, %v966_v28  ;;  %v982_v40 = vmul.f32 %v2917_v14, %v2553_v46  ;;  %v2919_v28 = vld [vmem:[#allocation78_spill] sm:$0xff]  ;;  %v2925_v32 = vld [vmem:[#allocation84_spill] sm:$0xff] }
 0x3b9   : > { %v775_v13 = vadd.f32 %v773_v17, %v766_v63  ;;  %705 = vrot.lane.b32.xlu1 %v700_v7, %s1609_s21  ;;  %703 = vrot.lane.b32.xlu0 %v699_v37, %s1609_s21  ;;  %v991_v34 = vmul.f32 %v2918_v42, %v2575_v10  ;;  %v974_v48 = vadd.f32 %v972_v38, %v2475_v41  ;;  %v2926_v37 = vld [vmem:[#allocation64_spill] sm:$0xff]  ;;  %vm859_vm5 = vcmask 130048  }
 0x3ba   : > { %v981_v54 = vmul.f32 %v2917_v14, %v2549_v50  ;;  %v984_v27 = vadd.f32 %v982_v40, %v975_v0  ;;  %v990_v43 = vmul.f32 %v2918_v42, %v2571_v19  ;;  %v1049_v2 = vmul.f32 %v2919_v28, %v2520_v36 }
 0x3bb   : > { %v1058_v59 = vmul.f32 %v2920_v55, %v2553_v46  ;;  %v1067_v25 = vmul.f32 %v2921_v62, %v2575_v10  ;;  %v1048_v41 = vmul.f32 %v2919_v28, %v2516_v56  ;;  %v1057_v38 = vmul.f32 %v2920_v55, %v2549_v50 }
 0x3bc   : > { %v983_v18 = vadd.f32 %v981_v54, %v974_v48  ;;  %v993_v39 = vadd.f32 %v991_v34, %v984_v27  ;;  %v1051_v1 = vadd.f32 %v1049_v2, %v2504_v21  ;;  %v1066_v33 = vmul.f32 %v2921_v62, %v2571_v19  ;;  %v2924_v21 = vld [vmem:[#allocation83_spill] sm:$0xff] }
 0x3bd   : > { %v1125_v44 = vmul.f32 %v2922_v58, %v2520_v36  ;;  %857 = vrot.lane.b32.xlu1 %v852_v15, %s1610_s25  ;;  %855 = vrot.lane.b32.xlu0 %v851_v11, %s1610_s25  ;;  %v1050_v52 = vadd.f32 %v1048_v41, %v2480_v57  ;;  %v1134_v45 = vmul.f32 %v2923_v4, %v2553_v46  ;;  %vm707_vm8 = vcmask 392192  }
 0x3be   : > { %v992_v3 = vadd.f32 %v990_v43, %v983_v18  ;;  %v1060_v22 = vadd.f32 %v1058_v59, %v1051_v1  ;;  %v1143_v60 = vmul.f32 %v2924_v21, %v2575_v10  ;;  %v1124_v20 = vmul.f32 %v2922_v58, %v2516_v56 }
 0x3bf   : > { %v1127_v5 = vadd.f32 %v1125_v44, %v2523_v49  ;;  %v1059_v47 = vadd.f32 %v1057_v38, %v1050_v52  ;;  %v1133_v29 = vmul.f32 %v2923_v4, %v2549_v50  ;;  %v1142_v23 = vmul.f32 %v2924_v21, %v2571_v19 }
 0x3c0   : > { %v890_v57 = vmul.f32 %v2381_v12, %v2459_v35  ;;  %v1069_v51 = vadd.f32 %v1067_v25, %v1060_v22  ;;  %v1126_v49 = vadd.f32 %v1124_v20, %v2485_v53  ;;  %v891_v31 = vadd.f32 %v2527_v61, %v2493_v9  ;;  %v2927_v53 = vld [vmem:[#allocation65_spill] sm:$0xff] }
 0x3c1   : > { %v1136_v24 = vadd.f32 %v1134_v45, %v1127_v5  ;;  %781 = vrot.lane.b32.xlu1 %v776_v6, %s1611_s12  ;;  %779 = vrot.lane.b32.xlu0 %v775_v13, %s1611_s12  ;;  %v1068_v26 = vadd.f32 %v1066_v33, %v1059_v47  ;;  %v907_v63 = vmul.f32 %v2925_v32, %v2516_v56  ;;  %v2928_v9 = vld [vmem:[#allocation85_spill] sm:$0xff]  ;;  %vm783_vm9 = vcmask 261120  }
 0x3c2   : > { %v892_v8 = vadd.f32 %v890_v57, %v2499_v30  ;;  %v1135_v7 = vadd.f32 %v1133_v29, %v1126_v49  ;;  %v900_v12 = vadd.f32 %v2926_v37, %v891_v31  ;;  %v908_v35 = vmul.f32 %v2925_v32, %v2520_v36  ;;  %v2933_v31 = vld [vmem:[#allocation21_spill] sm:$0xff]  ;;  %v2934_v32 = vld [vmem:[#allocation23_spill] sm:$0xff] }
 0x3c3   : > { %v1145_v17 = vadd.f32 %v1143_v60, %v1136_v24  ;;  %v916_v61 = vmul.f32 %v2928_v9, %v2549_v50  ;;  %v917_v11 = vmul.f32 %v2928_v9, %v2553_v46  ;;  %v925_v56 = vmul.f32 %v2512_v16, %v2571_v19 }
 0x3c4   : > { %v901_v15 = vadd.f32 %v2927_v53, %v892_v8  ;;  %v1144_v6 = vadd.f32 %v1142_v23, %v1135_v7  ;;  %v909_v30 = vadd.f32 %v907_v63, %v900_v12  ;;  %v926_v36 = vmul.f32 %v2512_v16, %v2575_v10 }
 0x3c5   : > { %998 = vrot.lane.b32.xlu1 %v993_v39, %s1612_s8  ;;  %996 = vrot.lane.b32.xlu0 %v992_v3, %s1612_s8  ;;  %vm1000_vm10 = vcmask 916480   ;;  %vm1076_vm11 = vcmask 785408   ;;  %vm1152_vm12 = vcmask 654336  }
 0x3c6   : > { %v910_v13 = vadd.f32 %v908_v35, %v901_v15  ;;  %v918_v0 = vadd.f32 %v916_v61, %v909_v30 }
 0x3c8   : > { %v919_v14 = vadd.f32 %v917_v11, %v910_v13  ;;  %v927_v40 = vadd.f32 %v925_v56, %v918_v0 }
 0x3c9   : > { %1074 = vrot.lane.b32.xlu1 %v1069_v51, %s1613_s16  ;;  %1072 = vrot.lane.b32.xlu0 %v1068_v26, %s1613_s16 }
 0x3ca   : > { %v928_v50 = vadd.f32 %v926_v36, %v919_v14 }
 0x3cd   : > { %1150 = vrot.lane.b32.xlu1 %v1145_v17, %s1614_s10  ;;  %1148 = vrot.lane.b32.xlu0 %v1144_v6, %s1614_s10  ;;  %v2935_v17 = vld [vmem:[#allocation22_spill] sm:$0xff] }
 0x42b   : > { %v706_v46 = vpop.permute.xlu1 %705  ;;  %v704_v42 = vpop.permute.xlu0 %703 }
 0x42c   : > { %v708_v28 = vsel %vm707_vm8, %v704_v42, %v706_v46  ;;  %v711_v2 = vsel %vm707_vm8, 0.0, %v704_v42 }
 0x42f   : > { %v858_v19 = vpop.permute.xlu1 %857  ;;  %v856_v34 = vpop.permute.xlu0 %855 }
 0x430   : > { %v860_v16 = vsel %vm859_vm5, %v856_v34, %v858_v19  ;;  %v863_v10 = vsel %vm859_vm5, 0.0, %v856_v34 }
 0x431   : > { %v864_v38 = vadd.f32 %v863_v10, %v711_v2  ;;  %v865_v39 = vadd.f32 %v860_v16, %v708_v28 }
 0x433   : > { %v782_v48 = vpop.permute.xlu1 %781  ;;  %v780_v54 = vpop.permute.xlu0 %779 }
 0x434   : > { %v784_v18 = vsel %vm783_vm9, %v780_v54, %v782_v48  ;;  %v787_v62 = vsel %vm783_vm9, 0.0, %v780_v54 }
 0x435   : > { %v929_v58 = vadd.f32 %v927_v40, %v787_v62  ;;  %v930_v44 = vadd.f32 %v928_v50, %v784_v18 }
 0x437   : > { %v999_v27 = vpop.permute.xlu1 %998  ;;  %v997_v43 = vpop.permute.xlu0 %996 }
 0x438   : > { %v1004_v25 = vsel %vm1000_vm10, %v999_v27, 0.0  ;;  %v1001_v41 = vsel %vm1000_vm10, %v997_v43, %v999_v27 }
 0x439   : > { %v1006_v3 = vadd.f32 %v1004_v25, %v865_v39  ;;  %v1005_v52 = vadd.f32 %v1001_v41, %v864_v38 }
 0x43b   : > { %v1075_v55 = vpop.permute.xlu1 %1074  ;;  %v1073_v59 = vpop.permute.xlu0 %1072 }
 0x43c   : > { %v1080_v1 = vsel %vm1076_vm11, %v1075_v55, 0.0  ;;  %v1077_v33 = vsel %vm1076_vm11, %v1073_v59, %v1075_v55 }
 0x43d   : > { %v1082_v21 = vadd.f32 %v1080_v1, %v930_v44  ;;  %v1081_v60 = vadd.f32 %v1077_v33, %v929_v58 }
 0x43f   : > { %v1151_v4 = vpop.permute.xlu1 %1150  ;;  %v1149_v45 = vpop.permute.xlu0 %1148 }
 0x440   : > { %v1156_v22 = vsel %vm1152_vm12, %v1151_v4, 0.0  ;;  %v1153_v5 = vsel %vm1152_vm12, %v1149_v45, %v1151_v4 }
 0x441   : > { %v1158_v20 = vadd.f32 %v1156_v22, %v1006_v3  ;;  %v1157_v47 = vadd.f32 %v1153_v5, %v1005_v52 }
 0x443   : > { %v1160_v29 = vadd.f32 %v1158_v20, %v1082_v21  ;;  %v1159_v23 = vadd.f32 %v1157_v47, %v1081_v60 }
 0x445   : > { %v1164_v57 = vrot.slane %v1160_v29, 1  ;;  %v1163_v51 = vrot.slane %v1159_v23, 1 }
 0x447   : > { %v1168_v24 = vadd.f32 %v1164_v57, %v1160_v29  ;;  %v1167_v49 = vadd.f32 %v1163_v51, %v1159_v23 }
 0x449   : > { %v1176_v26 = vrot.slane %v1168_v24, %v2933_v31  ;;  %v1172_v8 = vrot.slane %v1167_v49, %v2933_v31 }
 0x44b   : > { %v1178_v63 = vmul.f32 %v1176_v26, %v2934_v32  ;;  %v1177_v7 = vmul.f32 %v1172_v8, %v2935_v17 }
 0x44d   : > { %1180 = vst [vmem:[%s227_s19 + $0x8] sm:$0xff] %v1178_v63  ;;  %1179 = vst [vmem:[%s227_s19] sm:$0xff] %v1177_v7 }
 0x44e   : > { %1542 = shalt.err (!%p1539_p3)
}
 0x44f   : > { %s1543_s2 = scalar_lea.hbm %s2655_s7, 256  ;;  %s1547_s27 = scalar_lea.hbm %s2936_s30, 512 }
 0x450   : > { %p1544_p12 = scmp.ne.s32.totalorder %s2655_s7, %s1543_s2  ;;  %p1548_p4 = scmp.lt.s32.totalorder %s2655_s7, %s2936_s30 }
 0x451   : > { %p1549_p6 = scmp.lt.s32.totalorder %s1547_s27, %s1543_s2 }
 0x452   : > { %p1545_p5 = pnand %p1544_p12, %p2937_p11 }
 0x453   : > { %p1550_p8 = por %p1549_p6, %p1548_p4 }
 0x454   : > { %p1546_p7 = pneg %p1545_p5 }
 0x456   : > { %p1551_p9 = pnand %p1550_p8, %p1546_p7 }
 0x458   : > { %1554 = shalt.err (!%p1551_p9)
}
 0x459   : > { %1417 = dma.vmem_to_hbm [thread:$0]  (%p2937_p11), %s1197_s0, 256, %s2655_s7, %s1182_s26  }
 0x45a PF: > { %s2938_s11 = sld [smem:[#allocation11_spill]] }
 0x45b   : > { %s2939_s13 = sld [smem:[#allocation16_spill]] }
 0x45c   : > { %s2940_s14 = sld [smem:[#allocation14_spill]] }
 0x460   : > { %s1208_s21 = sand.u32 1, %s2938_s11  }
 0x461   : > { %p2941_p13 = scmp.ne.s32.totalorder %s2939_s13, 0  ;;  %s1209_s25 = scalar_lea.sflag [#allocation4], %s1208_s21 }
 0x462   : > { %p2942_p10 = scmp.ge.s32.totalorder %s2940_s14, 2 }
 0x464   : > { %p1428_p2 = pnand %p2942_p10, %p2941_p13 }
 0x466   : > { %p1429_p1 = pneg %p1428_p2 }
 0x468   : > { %1580 = dma.done.wait (%p1429_p1), %s1209_s25, 256  }
 0x469   : > { %1582 = vsyncadd (%p1429_p1), %s1209_s25, 4294967040  ;;  %s2943_s18 = sld [smem:[#allocation17_spill]] }
 0x46a   : > { %s2944_s15 = sld [smem:[#allocation12_spill]] }
 0x46b   : > { %s2945_s16 = sld [smem:[#allocation13_spill]] }
 0x46c   : > { %s2946_s17 = sld [smem:[#allocation18_spill]] }
 0x46f   : > { %p18_p0 = scmp.ge.s32.totalorder %s2943_s18, 4  }
 0x471   :  { %20 = sbr.rel (!%p18_p0) target bundleno = 12 (0xc), region = 86 }
 0x476   :  { %1214 = vsyncpa [#allocation3], 1 }
 0x477   :  { %1216 = vsyncpa [#allocation3 + $0x1], 1 }
 0x478   :  { %1217 = vsyncpa [#allocation4], 1 }
 0x479   :  { %1219 = vsyncpa [#allocation4 + $0x1], 1 }
 0x47a   :  { %1220 = vsyncpa [#allocation5], 1 }
 0x47b   :  { %1222 = vsyncpa [#allocation5 + $0x1], 1 }

</bundles_post_ra>
